<compile_context>
chip_gen: v7x
topology: tpu7x:2x2x1
jax: 0.10.0
libtpu: 0.0.40
codegen_flags: <defaults>
</compile_context>

<pallas_src>
import math
import jax
import jax.numpy as jnp
from jax.experimental import pallas as pl
from jax.experimental.pallas import tpu as pltpu


def _round_up(n, m):
    return ((n + m - 1) // m) * m


# ----------------------------- Pallas kernel ------------------------------ #
def _autoencoder_kernel(x_ref,
                        w1, b1, w2, b2, w3, b3,   # encoder
                        w4, b4, w5, b5, w6, b6,   # decoder
                        o_ref):
    """Fused 6-layer MLP autoencoder forward for one (TM, flat_dim) batch tile.

    Weights live in VMEM as bf16 (in, out); biases are f32 (1, out).
    Each layer:  f32_acc( bf16(h) @ W_bf16 ) + b_f32  -> ReLU (f32)  -> bf16 carry.
    """
    def layer(h_bf16, w_ref, b_ref):
        # bf16 MXU matmul, f32 accumulation; bias add stays f32 (v5e-safe VPU math).
        return jnp.dot(h_bf16, w_ref[...],
                       preferred_element_type=jnp.float32) + b_ref[...]

    def relu_bf16(y_f32):
        # ReLU in f32, then carry the activation as bf16 so the live inter-layer
        # footprint is half-size (matters for vreg/VMEM pressure at TM=512).
        return jnp.maximum(y_f32, 0.0).astype(jnp.bfloat16)

    h = x_ref[...]                        # already bf16 (cast happens in the wrapper)
    # encoder
    h = relu_bf16(layer(h, w1, b1))
    h = relu_bf16(layer(h, w2, b2))
    h = relu_bf16(layer(h, w3, b3))       # hidden_linear + hidden_activation
    # decoder
    h = relu_bf16(layer(h, w4, b4))
    h = relu_bf16(layer(h, w5, b5))
    o_ref[...] = layer(h, w6, b6).astype(o_ref.dtype)   # out_linear + Identity
    # TODO(synk): on v7x, w1/w6 (the two 512 KiB bf16 matrices) could use the native
    # fp8 MXU path with per-output-channel f32 scales — only worth it for the
    # tiny-batch / grid=1 latency case where the one-time weight DMA dominates.


# ------------------------------- wrapper ----------------------------------- #
def autoencoder_forward(x, params, input_dim, tm=512):
    """x: (B, *input_dim) array (NCHW, like PyTorch).
    params: list of (W_bf16, b_f32) with W of shape (in, out), b of shape (1, out).
    Returns (B, *input_dim) float32."""
    B = x.shape[0]
    flat_dim = 1
    for d in input_dim:
        flat_dim *= d

    # DMA activations as bf16: the first matmul consumes bf16 anyway, so an f32
    # input copy would carry 2x the bytes of the dominant HBM traffic.
    x_flat = x.reshape(B, flat_dim).astype(jnp.bfloat16)

    # Batch tile: multiple of 16 rows (bf16 sublane granule), capped at `tm`
    # (512 default ~= 85% of HBM roofline per measured tiled-copy data; v5e with its
    # 128 MiB VMEM could go to 1024), and never larger than ~half the rounded batch
    # so the grid has >= 2 steps whenever B allows (keeps both v7x TCs busy).
    B16 = _round_up(B, 16)
    TM = max(16, min(tm, _round_up((B16 + 1) // 2, 16)))

    # Ragged last tile is masked by Pallas (reads past B are ignored garbage that is
    # never written back), so no jnp.pad copy of the whole batch is materialized.
    grid = (pl.cdiv(B, TM),)

    flat_params = []
    for w, b in params:
        flat_params.extend([w, b])

    # x / out: tiled over batch (double-buffered by Pallas).
    x_spec = pl.BlockSpec((TM, flat_dim), lambda i: (i, 0))
    out_spec = pl.BlockSpec((TM, flat_dim), lambda i: (i, 0))
    # weights / biases: full-array blocks, constant index_map -> DMA'd from HBM once
    # and VMEM-resident across the whole grid.
    # TODO(synk): pipeline_mode=pl.Buffered(1) on these constant-index specs would
    # drop the pointless second weight buffer (~1.2 MiB VMEM headroom).
    param_specs = [pl.BlockSpec(p.shape, lambda i: (0, 0)) for p in flat_params]

    # VMEM budget coupled to TM (v7x only has 64 MiB/TC):
    #   TM=512 -> ~2 MiB bf16 in + ~4 MiB f32 out (double-buffered) + ~2.4 MiB weights
    #   + a few MiB fused intermediates -> 32 MiB limit is ample; small tiles fit in 16.
    vmem_limit = (32 << 20) if TM > 256 else (16 << 20)

    out_flat = pl.pallas_call(
        _autoencoder_kernel,
        out_shape=jax.ShapeDtypeStruct((B, flat_dim), jnp.float32),
        grid=grid,
        in_specs=[x_spec] + param_specs,
        out_specs=out_spec,
        compiler_params=pltpu.CompilerParams(
            dimension_semantics=("parallel",),     # megacore sharding on v7x
            vmem_limit_bytes=vmem_limit,
        ),
    )(x_flat, *flat_params)

    return out_flat.reshape(B, *input_dim)


# --------------------------- parameter creation ----------------------------- #
def init_params(key, input_dim, layers_dim, latent_dim):
    """Deterministic init matching the module's layer shapes.
    Weights: Kaiming-style uniform bound (ReLU gain), stored as bf16 (kernel dtype).
    Biases: zeros, f32 (as in the PyTorch __init_weights)."""
    flat_dim = 1
    for d in input_dim:
        flat_dim *= d

    # layer (fan_in, fan_out) list, mirroring the PyTorch construction
    enc_dims = list(zip([flat_dim] + layers_dim, layers_dim))
    enc_dims.append((([flat_dim] + layers_dim)[-1], latent_dim))          # hidden_linear
    rev = layers_dim[::-1]
    dec_dims = list(zip([latent_dim] + rev, rev))
    dec_dims.append((([latent_dim] + rev)[-1], flat_dim))                 # out_linear

    params = []
    for fan_in, fan_out in enc_dims + dec_dims:
        key, sub = jax.random.split(key)
        bound = math.sqrt(2.0) * math.sqrt(3.0 / fan_in)   # kaiming-uniform, ReLU gain
        w = jax.random.uniform(sub, (fan_in, fan_out), jnp.float32,
                               minval=-bound, maxval=bound).astype(jnp.bfloat16)
        b = jnp.zeros((1, fan_out), jnp.float32)
        params.append((w, b))
    return params


# ---------------------------------- main ------------------------------------ #
if __name__ == "__main__":
    # small shapes consistent with the module
    input_dim = (4, 16, 16)          # C, H, W  -> flattened 1024
    layers_dim = [256, 128]
    latent_dim = 32
    batch = 2

    key = jax.random.PRNGKey(0)
    key_x, key_p = jax.random.split(key)

    x = jax.random.normal(key_x, (batch,) + input_dim, dtype=jnp.float32)
    params = init_params(key_p, input_dim, layers_dim, latent_dim)

    out = autoencoder_forward(x, params, input_dim)
    out = jax.block_until_ready(out)

    assert out.shape == (batch,) + input_dim, out.shape
    assert out.dtype == jnp.float32

    # reference check in plain JAX using the exact same bf16-carried / f32-acc math
    h = x.reshape(batch, -1).astype(jnp.bfloat16)
    ref = None
    for i, (w, b) in enumerate(params):
        y = jnp.dot(h, w, preferred_element_type=jnp.float32) + b
        if i != len(params) - 1:
            h = jnp.maximum(y, 0.0).astype(jnp.bfloat16)
        else:
            ref = y
    ref = ref.reshape(batch, *input_dim)
    assert jnp.allclose(out, ref, atol=2e-2, rtol=2e-2), \
        float(jnp.max(jnp.abs(out - ref)))

    print("KERNEL_OK")
</pallas_src>

<mosaic_0001>
module attributes {stable_mosaic.version = 11 : i64} {
  func.func @_autoencoder_kernel(%arg0: i32, %arg1: memref<16x1024xbf16, #tpu.memory_space<vmem>>, %arg2: memref<1024x256xbf16, #tpu.memory_space<vmem>>, %arg3: memref<1x256xf32, #tpu.memory_space<vmem>>, %arg4: memref<256x128xbf16, #tpu.memory_space<vmem>>, %arg5: memref<1x128xf32, #tpu.memory_space<vmem>>, %arg6: memref<128x32xbf16, #tpu.memory_space<vmem>>, %arg7: memref<1x32xf32, #tpu.memory_space<vmem>>, %arg8: memref<32x128xbf16, #tpu.memory_space<vmem>>, %arg9: memref<1x128xf32, #tpu.memory_space<vmem>>, %arg10: memref<128x256xbf16, #tpu.memory_space<vmem>>, %arg11: memref<1x256xf32, #tpu.memory_space<vmem>>, %arg12: memref<256x1024xbf16, #tpu.memory_space<vmem>>, %arg13: memref<1x1024xf32, #tpu.memory_space<vmem>>, %arg14: memref<16x1024xf32, #tpu.memory_space<vmem>>) attributes {dimension_semantics = [#tpu.dimension_semantics<parallel>], iteration_bounds = array<i64: 1>, scalar_prefetch = 0 : i64, scratch_operands = 0 : i64, tpu.core_type = #tpu.core_type<tc>, window_params = [{transform_indices = @transform_0, window_bounds = array<i64: 16, 1024>}, {pipeline_mode = #tpu.pipeline_mode<synchronous>, transform_indices = @transform_1, window_bounds = array<i64: 1024, 256>}, {pipeline_mode = #tpu.pipeline_mode<synchronous>, transform_indices = @transform_2, window_bounds = array<i64: 1, 256>}, {pipeline_mode = #tpu.pipeline_mode<synchronous>, transform_indices = @transform_3, window_bounds = array<i64: 256, 128>}, {pipeline_mode = #tpu.pipeline_mode<synchronous>, transform_indices = @transform_4, window_bounds = array<i64: 1, 128>}, {pipeline_mode = #tpu.pipeline_mode<synchronous>, transform_indices = @transform_5, window_bounds = array<i64: 128, 32>}, {pipeline_mode = #tpu.pipeline_mode<synchronous>, transform_indices = @transform_6, window_bounds = array<i64: 1, 32>}, {pipeline_mode = #tpu.pipeline_mode<synchronous>, transform_indices = @transform_7, window_bounds = array<i64: 32, 128>}, {pipeline_mode = #tpu.pipeline_mode<synchronous>, transform_indices = @transform_8, window_bounds = array<i64: 1, 128>}, {pipeline_mode = #tpu.pipeline_mode<synchronous>, transform_indices = @transform_9, window_bounds = array<i64: 128, 256>}, {pipeline_mode = #tpu.pipeline_mode<synchronous>, transform_indices = @transform_10, window_bounds = array<i64: 1, 256>}, {pipeline_mode = #tpu.pipeline_mode<synchronous>, transform_indices = @transform_11, window_bounds = array<i64: 256, 1024>}, {pipeline_mode = #tpu.pipeline_mode<synchronous>, transform_indices = @transform_12, window_bounds = array<i64: 1, 1024>}, {transform_indices = @transform_13, window_bounds = array<i64: 16, 1024>}]} {
    %c0 = arith.constant 0 : index
    %c0_0 = arith.constant 0 : index
    %0 = vector.load %arg1[%c0, %c0_0] : memref<16x1024xbf16, #tpu.memory_space<vmem>>, vector<16x1024xbf16>
    %c0_1 = arith.constant 0 : index
    %c0_2 = arith.constant 0 : index
    %1 = vector.load %arg2[%c0_1, %c0_2] : memref<1024x256xbf16, #tpu.memory_space<vmem>>, vector<1024x256xbf16>
    %cst = arith.constant dense<0.000000e+00> : vector<16x256xf32>
    %2 = tpu.matmul %0, %1, %cst {dimension_numbers = #tpu.dot_dimension_numbers<[1], [0], [0], [1], [0, 0, 1, 1], [], []>} : vector<16x1024xbf16>, vector<1024x256xbf16>, vector<16x256xf32> -> vector<16x256xf32>
    %c0_3 = arith.constant 0 : index
    %c0_4 = arith.constant 0 : index
    %3 = vector.load %arg3[%c0_3, %c0_4] : memref<1x256xf32, #tpu.memory_space<vmem>>, vector<1x256xf32>
    %4 = vector.broadcast %3 : vector<1x256xf32> to vector<16x256xf32>
    %5 = arith.addf %2, %4 : vector<16x256xf32>
    %cst_5 = arith.constant 0.000000e+00 : f32
    %6 = vector.broadcast %cst_5 : f32 to vector<16x256xf32>
    %7 = arith.maximumf %5, %6 : vector<16x256xf32>
    %8 = arith.truncf %7 : vector<16x256xf32> to vector<16x256xbf16>
    %c0_6 = arith.constant 0 : index
    %c0_7 = arith.constant 0 : index
    %9 = vector.load %arg4[%c0_6, %c0_7] : memref<256x128xbf16, #tpu.memory_space<vmem>>, vector<256x128xbf16>
    %cst_8 = arith.constant dense<0.000000e+00> : vector<16x128xf32>
    %10 = tpu.matmul %8, %9, %cst_8 {dimension_numbers = #tpu.dot_dimension_numbers<[1], [0], [0], [1], [0, 0, 1, 1], [], []>} : vector<16x256xbf16>, vector<256x128xbf16>, vector<16x128xf32> -> vector<16x128xf32>
    %c0_9 = arith.constant 0 : index
    %c0_10 = arith.constant 0 : index
    %11 = vector.load %arg5[%c0_9, %c0_10] : memref<1x128xf32, #tpu.memory_space<vmem>>, vector<1x128xf32>
    %12 = vector.broadcast %11 : vector<1x128xf32> to vector<16x128xf32>
    %13 = arith.addf %10, %12 : vector<16x128xf32>
    %cst_11 = arith.constant 0.000000e+00 : f32
    %14 = vector.broadcast %cst_11 : f32 to vector<16x128xf32>
    %15 = arith.maximumf %13, %14 : vector<16x128xf32>
    %16 = arith.truncf %15 : vector<16x128xf32> to vector<16x128xbf16>
    %c0_12 = arith.constant 0 : index
    %c0_13 = arith.constant 0 : index
    %17 = vector.load %arg6[%c0_12, %c0_13] : memref<128x32xbf16, #tpu.memory_space<vmem>>, vector<128x32xbf16>
    %cst_14 = arith.constant dense<0.000000e+00> : vector<16x32xf32>
    %18 = tpu.matmul %16, %17, %cst_14 {dimension_numbers = #tpu.dot_dimension_numbers<[1], [0], [0], [1], [0, 0, 1, 1], [], []>} : vector<16x128xbf16>, vector<128x32xbf16>, vector<16x32xf32> -> vector<16x32xf32>
    %c0_15 = arith.constant 0 : index
    %c0_16 = arith.constant 0 : index
    %19 = vector.load %arg7[%c0_15, %c0_16] : memref<1x32xf32, #tpu.memory_space<vmem>>, vector<1x32xf32>
    %20 = vector.broadcast %19 : vector<1x32xf32> to vector<16x32xf32>
    %21 = arith.addf %18, %20 : vector<16x32xf32>
    %cst_17 = arith.constant 0.000000e+00 : f32
    %22 = vector.broadcast %cst_17 : f32 to vector<16x32xf32>
    %23 = arith.maximumf %21, %22 : vector<16x32xf32>
    %24 = arith.truncf %23 : vector<16x32xf32> to vector<16x32xbf16>
    %c0_18 = arith.constant 0 : index
    %c0_19 = arith.constant 0 : index
    %25 = vector.load %arg8[%c0_18, %c0_19] : memref<32x128xbf16, #tpu.memory_space<vmem>>, vector<32x128xbf16>
    %cst_20 = arith.constant dense<0.000000e+00> : vector<16x128xf32>
    %26 = tpu.matmul %24, %25, %cst_20 {dimension_numbers = #tpu.dot_dimension_numbers<[1], [0], [0], [1], [0, 0, 1, 1], [], []>} : vector<16x32xbf16>, vector<32x128xbf16>, vector<16x128xf32> -> vector<16x128xf32>
    %c0_21 = arith.constant 0 : index
    %c0_22 = arith.constant 0 : index
    %27 = vector.load %arg9[%c0_21, %c0_22] : memref<1x128xf32, #tpu.memory_space<vmem>>, vector<1x128xf32>
    %28 = vector.broadcast %27 : vector<1x128xf32> to vector<16x128xf32>
    %29 = arith.addf %26, %28 : vector<16x128xf32>
    %cst_23 = arith.constant 0.000000e+00 : f32
    %30 = vector.broadcast %cst_23 : f32 to vector<16x128xf32>
    %31 = arith.maximumf %29, %30 : vector<16x128xf32>
    %32 = arith.truncf %31 : vector<16x128xf32> to vector<16x128xbf16>
    %c0_24 = arith.constant 0 : index
    %c0_25 = arith.constant 0 : index
    %33 = vector.load %arg10[%c0_24, %c0_25] : memref<128x256xbf16, #tpu.memory_space<vmem>>, vector<128x256xbf16>
    %cst_26 = arith.constant dense<0.000000e+00> : vector<16x256xf32>
    %34 = tpu.matmul %32, %33, %cst_26 {dimension_numbers = #tpu.dot_dimension_numbers<[1], [0], [0], [1], [0, 0, 1, 1], [], []>} : vector<16x128xbf16>, vector<128x256xbf16>, vector<16x256xf32> -> vector<16x256xf32>
    %c0_27 = arith.constant 0 : index
    %c0_28 = arith.constant 0 : index
    %35 = vector.load %arg11[%c0_27, %c0_28] : memref<1x256xf32, #tpu.memory_space<vmem>>, vector<1x256xf32>
    %36 = vector.broadcast %35 : vector<1x256xf32> to vector<16x256xf32>
    %37 = arith.addf %34, %36 : vector<16x256xf32>
    %cst_29 = arith.constant 0.000000e+00 : f32
    %38 = vector.broadcast %cst_29 : f32 to vector<16x256xf32>
    %39 = arith.maximumf %37, %38 : vector<16x256xf32>
    %40 = arith.truncf %39 : vector<16x256xf32> to vector<16x256xbf16>
    %c0_30 = arith.constant 0 : index
    %c0_31 = arith.constant 0 : index
    %41 = vector.load %arg12[%c0_30, %c0_31] : memref<256x1024xbf16, #tpu.memory_space<vmem>>, vector<256x1024xbf16>
    %cst_32 = arith.constant dense<0.000000e+00> : vector<16x1024xf32>
    %42 = tpu.matmul %40, %41, %cst_32 {dimension_numbers = #tpu.dot_dimension_numbers<[1], [0], [0], [1], [0, 0, 1, 1], [], []>} : vector<16x256xbf16>, vector<256x1024xbf16>, vector<16x1024xf32> -> vector<16x1024xf32>
    %c0_33 = arith.constant 0 : index
    %c0_34 = arith.constant 0 : index
    %43 = vector.load %arg13[%c0_33, %c0_34] : memref<1x1024xf32, #tpu.memory_space<vmem>>, vector<1x1024xf32>
    %44 = vector.broadcast %43 : vector<1x1024xf32> to vector<16x1024xf32>
    %45 = arith.addf %42, %44 : vector<16x1024xf32>
    %c0_35 = arith.constant 0 : index
    %c0_36 = arith.constant 0 : index
    %46 = vector.load %arg14[%c0_35, %c0_36] : memref<16x1024xf32, #tpu.memory_space<vmem>>, vector<16x1024xf32>
    tpu.vector_store %arg14[%c0_35, %c0_36], %45 {strides = array<i32>} : memref<16x1024xf32, #tpu.memory_space<vmem>>, vector<16x1024xf32>,
    return
  }
  func.func @transform_0(%arg0: i32) -> (i32, i32) {
    %c0_i32 = arith.constant 0 : i32
    %c0_i32_0 = arith.constant 0 : i32
    return %arg0, %c0_i32 : i32, i32
  }
  func.func @transform_1(%arg0: i32) -> (i32, i32) {
    %c0_i32 = arith.constant 0 : i32
    %c0_i32_0 = arith.constant 0 : i32
    %c0_i32_1 = arith.constant 0 : i32
    return %c0_i32, %c0_i32_0 : i32, i32
  }
  func.func @transform_2(%arg0: i32) -> (i32, i32) {
    %c0_i32 = arith.constant 0 : i32
    %c0_i32_0 = arith.constant 0 : i32
    %c0_i32_1 = arith.constant 0 : i32
    return %c0_i32, %c0_i32_0 : i32, i32
  }
  func.func @transform_3(%arg0: i32) -> (i32, i32) {
    %c0_i32 = arith.constant 0 : i32
    %c0_i32_0 = arith.constant 0 : i32
    %c0_i32_1 = arith.constant 0 : i32
    return %c0_i32, %c0_i32_0 : i32, i32
  }
  func.func @transform_4(%arg0: i32) -> (i32, i32) {
    %c0_i32 = arith.constant 0 : i32
    %c0_i32_0 = arith.constant 0 : i32
    %c0_i32_1 = arith.constant 0 : i32
    return %c0_i32, %c0_i32_0 : i32, i32
  }
  func.func @transform_5(%arg0: i32) -> (i32, i32) {
    %c0_i32 = arith.constant 0 : i32
    %c0_i32_0 = arith.constant 0 : i32
    %c0_i32_1 = arith.constant 0 : i32
    return %c0_i32, %c0_i32_0 : i32, i32
  }
  func.func @transform_6(%arg0: i32) -> (i32, i32) {
    %c0_i32 = arith.constant 0 : i32
    %c0_i32_0 = arith.constant 0 : i32
    %c0_i32_1 = arith.constant 0 : i32
    return %c0_i32, %c0_i32_0 : i32, i32
  }
  func.func @transform_7(%arg0: i32) -> (i32, i32) {
    %c0_i32 = arith.constant 0 : i32
    %c0_i32_0 = arith.constant 0 : i32
    %c0_i32_1 = arith.constant 0 : i32
    return %c0_i32, %c0_i32_0 : i32, i32
  }
  func.func @transform_8(%arg0: i32) -> (i32, i32) {
    %c0_i32 = arith.constant 0 : i32
    %c0_i32_0 = arith.constant 0 : i32
    %c0_i32_1 = arith.constant 0 : i32
    return %c0_i32, %c0_i32_0 : i32, i32
  }
  func.func @transform_9(%arg0: i32) -> (i32, i32) {
    %c0_i32 = arith.constant 0 : i32
    %c0_i32_0 = arith.constant 0 : i32
    %c0_i32_1 = arith.constant 0 : i32
    return %c0_i32, %c0_i32_0 : i32, i32
  }
  func.func @transform_10(%arg0: i32) -> (i32, i32) {
    %c0_i32 = arith.constant 0 : i32
    %c0_i32_0 = arith.constant 0 : i32
    %c0_i32_1 = arith.constant 0 : i32
    return %c0_i32, %c0_i32_0 : i32, i32
  }
  func.func @transform_11(%arg0: i32) -> (i32, i32) {
    %c0_i32 = arith.constant 0 : i32
    %c0_i32_0 = arith.constant 0 : i32
    %c0_i32_1 = arith.constant 0 : i32
    return %c0_i32, %c0_i32_0 : i32, i32
  }
  func.func @transform_12(%arg0: i32) -> (i32, i32) {
    %c0_i32 = arith.constant 0 : i32
    %c0_i32_0 = arith.constant 0 : i32
    %c0_i32_1 = arith.constant 0 : i32
    return %c0_i32, %c0_i32_0 : i32, i32
  }
  func.func @transform_13(%arg0: i32) -> (i32, i32) {
    %c0_i32 = arith.constant 0 : i32
    %c0_i32_0 = arith.constant 0 : i32
    return %arg0, %c0_i32 : i32, i32
  }
}

</mosaic_0001>

<bundles_post_ra>
// kernel: tpu_custom_call.1
= control target key start
LH: loop header
LB: loop body
LE: loop exit
PB: predicated region body
PF: predicated region fallthrough
CT: control target
= control target key end

     0   :  { %18 = vsyncpa [#allocation3], 0  ;;  %s4114_s0 = inlined_call_operand.vmem [shape: bf16[2,1024], index: 0, kind: input, shape index: {}]   ;;  %s4115_s1 = inlined_call_operand.hbm [shape: bf16[1024,256], index: 1, kind: input, shape index: {}]   ;;  %s4116_s2 = inlined_call_operand.vmem [shape: f32[1,256], index: 2, kind: input, shape index: {}]   ;;  %s4117_s3 = inlined_call_operand.hbm [shape: bf16[256,128], index: 3, kind: input, shape index: {}]   ;;  %s4118_s4 = inlined_call_operand.vmem [shape: f32[1,128], index: 4, kind: input, shape index: {}]   ;;  %s4119_s5 = inlined_call_operand.vmem [shape: bf16[128,32], index: 5, kind: input, shape index: {}]   ;;  %s4120_s6 = inlined_call_operand.vmem [shape: f32[1,32], index: 6, kind: input, shape index: {}]   ;;  %s4121_s7 = inlined_call_operand.vmem [shape: bf16[32,128], index: 7, kind: input, shape index: {}]   ;;  %s4122_s8 = inlined_call_operand.vmem [shape: f32[1,128], index: 8, kind: input, shape index: {}]   ;;  %s4123_s9 = inlined_call_operand.hbm [shape: bf16[128,256], index: 9, kind: input, shape index: {}]   ;;  %s4124_s10 = inlined_call_operand.vmem [shape: f32[1,256], index: 10, kind: input, shape index: {}]   ;;  %s4125_s11 = inlined_call_operand.hbm [shape: bf16[256,1024], index: 11, kind: input, shape index: {}]   ;;  %s4126_s12 = inlined_call_operand.vmem [shape: f32[1,1024], index: 12, kind: input, shape index: {}]   ;;  %s4127_s13 = inlined_call_operand.hbm [shape: f32[2,1024], index: 13, kind: output, shape index: {}]  }
   0x1   :  { %19 = vsyncpa [#allocation6], 0 }
   0x2   :  { %20 = vsyncpa [#allocation9], 0 }
   0x3   :  { %21 = vsyncpa [#allocation4], 0  ;;  %s3704_s25 = smov [#allocation5]   ;;  %s3586_s29 = scalar_lea.hbm %s4117_s3, 2048 }
   0x4   :  { %s43_s26 = sshll.u32 %s3704_s25, 4  ;;  %p3587_p0 = scmp.ne.s32.totalorder %s4117_s3, %s3586_s29  ;;  %s44_s26 = int_to_ptr.vmem [resolvable:$true] %s43_s26 }
   0x5   :  { %p3590_p1 = scmp.lt.u32.totalorder %s3586_s29, %s4117_s3 }
   0x7   :  { %p3592_p2 = pnand %p3590_p1, %p3587_p0 }
   0x9   :  { %3595 = shalt.err (!%p3592_p2)
}
   0xa   :  { %s3596_s17 = scalar_lea.vmem %s44_s26, 2048  ;;  %p3601_p4 = scmp.lt.s32.totalorder %s44_s26, %s44_s26 }
   0xb   :  { %p3597_p3 = scmp.ne.s32.totalorder %s44_s26, %s3596_s17  ;;  %p3602_p5 = scmp.lt.s32.totalorder %s3596_s17, %s3596_s17 }
   0xd   :  { %p3603_p6 = por %p3602_p5, %p3601_p4 }
   0xf   :  { %p3604_p7 = pnand %p3603_p6, %p3597_p3 }
  0x11   :  { %3607 = shalt.err (!%p3604_p7)
}
  0x12   :  { %s3705_s18 = smov 64   ;;  %s3706_s19 = smov 4  }
  0x13   :  { %49 = dma.hbm_to_vmem [thread:$0]  %s4117_s3, 2048, %s44_s26, [#allocation6], %s3705_s18, %s3705_s18, %s3706_s19  }
  0x14   :  { %s3707_s22 = smov [#allocation2]   ;;  %s3608_s27 = scalar_lea.hbm %s4115_s1, 16384 }
  0x15   :  { %s29_s23 = sshll.u32 %s3707_s22, 4  ;;  %p3609_p8 = scmp.ne.s32.totalorder %s4115_s1, %s3608_s27  ;;  %s30_s23 = int_to_ptr.vmem [resolvable:$true] %s29_s23 }
  0x16   :  { %p3612_p9 = scmp.lt.u32.totalorder %s3608_s27, %s4115_s1 }
  0x18   :  { %p3614_p10 = pnand %p3612_p9, %p3609_p8 }
  0x1a   :  { %3617 = shalt.err (!%p3614_p10)
}
  0x1b   :  { %s3618_s15 = scalar_lea.vmem %s30_s23, 16384  ;;  %p3623_p12 = scmp.lt.s32.totalorder %s30_s23, %s30_s23 }
  0x1c   :  { %p3619_p11 = scmp.ne.s32.totalorder %s30_s23, %s3618_s15  ;;  %p3624_p13 = scmp.lt.s32.totalorder %s3618_s15, %s3618_s15 }
  0x1e   :  { %p3625_p0 = por %p3624_p13, %p3623_p12 }
  0x20   :  { %p3626_p1 = pnand %p3625_p0, %p3619_p11 }
  0x22   :  { %3629 = shalt.err (!%p3626_p1)
}
  0x23   :  { %s3708_s3 = smov 128   ;;  %s3709_s26 = smov 8  }
  0x24   :  { %35 = dma.hbm_to_vmem [thread:$0]  %s4115_s1, 16384, %s30_s23, [#allocation3], %s3708_s3, %s3708_s3, %s3709_s26  }
  0x25   :  { %s3710_s18 = smov [#allocation7]   ;;  %s3711_s20 = smov [#allocation8]  }
  0x26   :  { %s65_s19 = sshll.u32 %s3710_s18, 4  ;;  %s79_s21 = sshll.u32 %s3711_s20, 4  ;;  %s66_s19 = int_to_ptr.vmem [resolvable:$true] %s65_s19  ;;  %s3816_s21 = int_to_ptr.vmem [resolvable:$true] %s79_s21 }
  0x27   :  { %s3630_s25 = scalar_lea.hbm %s4123_s9, 2048 }
  0x28   :  { %p3631_p2 = scmp.ne.s32.totalorder %s4123_s9, %s3630_s25  ;;  %p3634_p3 = scmp.lt.u32.totalorder %s3630_s25, %s4123_s9 }
  0x2a   :  { %p3636_p4 = pnand %p3634_p3, %p3631_p2 }
  0x2c   :  { %3639 = shalt.err (!%p3636_p4)
}
  0x2d   :  { %s3640_s1 = scalar_lea.vmem %s66_s19, 2048  ;;  %p3645_p6 = scmp.lt.s32.totalorder %s66_s19, %s66_s19 }
  0x2e   :  { %p3641_p5 = scmp.ne.s32.totalorder %s66_s19, %s3640_s1  ;;  %p3646_p7 = scmp.lt.s32.totalorder %s3640_s1, %s3640_s1 }
  0x30   :  { %p3647_p8 = por %p3646_p7, %p3645_p6 }
  0x32   :  { %p3648_p9 = pnand %p3647_p8, %p3641_p5 }
  0x34   :  { %3651 = shalt.err (!%p3648_p9)
}
  0x35   :  { %71 = dma.hbm_to_vmem [thread:$0]  %s4123_s9, 2048, %s66_s19, [#allocation6], %s3708_s3, %s3708_s3, %s3709_s26  }
  0x36   :  { %s3652_s17 = scalar_lea.hbm %s4125_s11, 16384 }
  0x37   :  { %p3653_p10 = scmp.ne.s32.totalorder %s4125_s11, %s3652_s17  ;;  %p3656_p11 = scmp.lt.u32.totalorder %s3652_s17, %s4125_s11 }
  0x39   :  { %p3658_p12 = pnand %p3656_p11, %p3653_p10 }
  0x3b   :  { %3661 = shalt.err (!%p3658_p12)
}
  0x3c   :  { %s3662_s25 = scalar_lea.vmem %s3816_s21, 16384  ;;  %p3667_p0 = scmp.lt.s32.totalorder %s3816_s21, %s3816_s21 }
  0x3d   :  { %p3663_p13 = scmp.ne.s32.totalorder %s3816_s21, %s3662_s25  ;;  %p3668_p1 = scmp.lt.s32.totalorder %s3662_s25, %s3662_s25 }
  0x3f   :  { %p3669_p2 = por %p3668_p1, %p3667_p0 }
  0x41   :  { %p3670_p3 = pnand %p3669_p2, %p3663_p13 }
  0x43   :  { %3673 = shalt.err (!%p3670_p3)
}
  0x44   :  { %s3712_s9 = smov 512   ;;  %s3713_s3 = smov 32  }
  0x45   :  { %85 = dma.hbm_to_vmem [thread:$0]  %s4125_s11, 16384, %s3816_s21, [#allocation9], %s3712_s9, %s3712_s9, %s3713_s3  }
  0x46   :  { %3696 = dma.done.wait [#allocation3], 16384  }
  0x47   :  { %3697 = vsyncadd [#allocation3], 4294950912 }
  0x48   :  { %3698 = dma.done.wait [#allocation6], 4096  }
  0x49   :  { %3699 = vsyncadd [#allocation6], 4294963200 }
  0x4a   :  { %3700 = dma.done.wait [#allocation9], 16384  }
  0x4b   :  { %3701 = vsyncadd [#allocation9], 4294950912  ;;  %v3332_v0 = vld [vmem:[#allocation2 + $0x4] ss:$8 sps:$4 sm:$0xff]   ;;  %v3334_v1 = vld [vmem:[#allocation2] ss:$8 sps:$4 sm:$0xff]   ;;  %v239_v9 = vlaneseq }
  0x4c   :  { %1041 = vmatprep.subr.bf16.mxu0 %v3332_v0  ;;  %v3335_v2 = vld [vmem:[#allocation2 + $0x14] ss:$8 sps:$4 sm:$0xff]   ;;  %v3337_v3 = vld [vmem:[#allocation2 + $0x10] ss:$8 sps:$4 sm:$0xff]   ;;  %v3338_v4 = vld [vmem:[#allocation2 + $0x24] ss:$8 sps:$4 sm:$0xff]  }
  0x4d   :  { %1042 = vmatpush1.bf16.msra.mxu0 %v3334_v1  ;;  %v3340_v5 = vld [vmem:[#allocation2 + $0x20] ss:$8 sps:$4 sm:$0xff]   ;;  %v3341_v6 = vld [vmem:[#allocation2 + $0x34] ss:$8 sps:$4 sm:$0xff]   ;;  %v3343_v7 = vld [vmem:[#allocation2 + $0x30] ss:$8 sps:$4 sm:$0xff]  }
  0x4e   :  { %1043 = vmatprep.subr.bf16.mxu0 %v3335_v2  ;;  %v3344_v8 = vld [vmem:[#allocation2 + $0x44] ss:$8 sps:$4 sm:$0xff]   ;;  %v3714_v10 = vmov 1966171168   ;;  %v3346_v12 = vld [vmem:[#allocation2 + $0x40] ss:$8 sps:$4 sm:$0xff]  }
  0x4f   :  { %v266_v11 = vunpack.c.l.s4 %v3714_v10  ;;  %v3347_v13 = vld [vmem:[#allocation2 + $0x54] ss:$8 sps:$4 sm:$0xff]   ;;  %v3847_v14 = vshrl.u32 %v239_v9, 7  ;;  %v3349_v16 = vld [vmem:[#allocation2 + $0x50] ss:$8 sps:$4 sm:$0xff]   ;;  %vm3716_vm0 = vmmov 0  }
  0x50   :  { %v3350_v17 = vld [vmem:[#allocation2 + $0x64] ss:$8 sps:$4 sm:$0xff]   ;;  %v3352_v18 = vld [vmem:[#allocation2 + $0x60] ss:$8 sps:$4 sm:$0xff]   ;;  %v3353_v20 = vld [vmem:[#allocation2 + $0x74] ss:$8 sps:$4 sm:$0xff]  }
  0x51   :  { %1044 = vmatpush1.bf16.msra.mxu0 %v3337_v3  ;;  %v267_v15 = vunpack.c.0.s8 %v266_v11  ;;  %v3380_v21 = vld [vmem:[%s4114_s0] ss:$8 sps:$4 sm:$0xff]   ;;  %v3383_v22 = vld [vmem:[%s4114_s0 + $0x10] ss:$8 sps:$4 sm:$0xff]   ;;  %v3356_v29 = vld [vmem:[#allocation2 + $0x84] ss:$8 sps:$4 sm:$0xff]  }
  0x52   :  { %1045 = vmatprep.subr.bf16.mxu0 %v3338_v4  ;;  %v3386_v23 = vld [vmem:[%s4114_s0 + $0x20] ss:$8 sps:$4 sm:$0xff]   ;;  %v3389_v24 = vld [vmem:[%s4114_s0 + $0x30] ss:$8 sps:$4 sm:$0xff]   ;;  %v3359_v37 = vld [vmem:[#allocation2 + $0x94] ss:$8 sps:$4 sm:$0xff]  }
  0x53   :  { %v3850_v19 = vsub.s32 %v267_v15, %v3847_v14  ;;  %v3355_v27 = vld [vmem:[#allocation2 + $0x70] ss:$8 sps:$4 sm:$0xff]   ;;  %v3358_v36 = vld [vmem:[#allocation2 + $0x80] ss:$8 sps:$4 sm:$0xff]   ;;  %v3362_v44 = vld [vmem:[#allocation2 + $0xa4] ss:$8 sps:$4 sm:$0xff]  }
  0x54   :  { %v3361_v43 = vld [vmem:[#allocation2 + $0x90] ss:$8 sps:$4 sm:$0xff]   ;;  %v3364_v45 = vld [vmem:[#allocation2 + $0xa0] ss:$8 sps:$4 sm:$0xff]   ;;  %v3365_v46 = vld [vmem:[#allocation2 + $0xb4] ss:$8 sps:$4 sm:$0xff]  }
  0x55   :  { %1046 = vmatpush1.bf16.msra.mxu0 %v3340_v5  ;;  %v271_v25 = vrot.slane %v3380_v21, %v3850_v19  ;;  %v285_v26 = vrot.slane %v3383_v22, %v3850_v19  ;;  %v299_v28 = vrot.slane %v3386_v23, %v3850_v19  ;;  %v313_v30 = vrot.slane %v3389_v24, %v3850_v19  ;;  %v3367_v47 = vld [vmem:[#allocation2 + $0xb0] ss:$8 sps:$4 sm:$0xff]   ;;  %v3368_v48 = vld [vmem:[#allocation2 + $0xc4] ss:$8 sps:$4 sm:$0xff]   ;;  %v3370_v49 = vld [vmem:[#allocation2 + $0xc0] ss:$8 sps:$4 sm:$0xff]  }
  0x56   :  { %1047 = vmatprep.subr.bf16.mxu0 %v3341_v6  ;;  %v3371_v50 = vld [vmem:[#allocation2 + $0xd4] ss:$8 sps:$4 sm:$0xff]   ;;  %v3373_v51 = vld [vmem:[#allocation2 + $0xd0] ss:$8 sps:$4 sm:$0xff]   ;;  %v3374_v52 = vld [vmem:[#allocation2 + $0xe4] ss:$8 sps:$4 sm:$0xff]  }
  0x57   :  { %v322_v31 = vcombine.high %v271_v25, %v285_v26  ;;  %v321_v32 = vcombine.low %v271_v25, %v285_v26  ;;  %v326_v33 = vcombine.high %v299_v28, %v313_v30  ;;  %v325_v35 = vcombine.low %v299_v28, %v313_v30  ;;  %v3382_v53 = vld [vmem:[%s4114_s0 + $0x4] ss:$8 sps:$4 sm:$0xff]   ;;  %v3385_v54 = vld [vmem:[%s4114_s0 + $0x14] ss:$8 sps:$4 sm:$0xff]   ;;  %v3376_v57 = vld [vmem:[#allocation2 + $0xe0] ss:$8 sps:$4 sm:$0xff]  }
  0x58   :  { %v3388_v55 = vld [vmem:[%s4114_s0 + $0x24] ss:$8 sps:$4 sm:$0xff]   ;;  %v3391_v56 = vld [vmem:[%s4114_s0 + $0x34] ss:$8 sps:$4 sm:$0xff]   ;;  %v3891_v59 = vrot.slane %v3382_v53, %v3850_v19  ;;  %v3894_v60 = vrot.slane %v3385_v54, %v3850_v19  ;;  %v3379_v63 = vld [vmem:[#allocation2 + $0xf0] ss:$8 sps:$4 sm:$0xff]  }
  0x59   :  { %1048 = vmatpush1.bf16.msra.mxu0 %v3343_v7  ;;  %v349_v34 = vrot.slane %v322_v31, %v3850_v19  ;;  %v377_v38 = vrot.slane %v326_v33, %v3850_v19  ;;  %v3871_v39 = vrot.slane %v321_v32, %v3850_v19  ;;  %v3874_v40 = vrot.slane %v325_v35, %v3850_v19  ;;  %v3377_v58 = vld [vmem:[#allocation2 + $0xf4] ss:$8 sps:$4 sm:$0xff]   ;;  %v3394_v0 = vld [vmem:[#allocation2 + $0x104] ss:$8 sps:$4 sm:$0xff]   ;;  %v3392_v4 = vld [vmem:[#allocation2 + $0x100] ss:$8 sps:$4 sm:$0xff]  }
  0x5a   :  { %1049 = vmatprep.subr.bf16.mxu0 %v3344_v8  ;;  %v3897_v61 = vrot.slane %v3388_v55, %v3850_v19  ;;  %v3900_v62 = vrot.slane %v3391_v56, %v3850_v19  ;;  %v323_v1 = vcombine.low %v3891_v59, %v3894_v60  ;;  %v3397_v8 = vld [vmem:[#allocation2 + $0x114] ss:$8 sps:$4 sm:$0xff]   ;;  %v3395_v10 = vld [vmem:[#allocation2 + $0x110] ss:$8 sps:$4 sm:$0xff]   ;;  %v3400_v11 = vld [vmem:[#allocation2 + $0x124] ss:$8 sps:$4 sm:$0xff]  }
  0x5b   :  { %v389_v41 = vcombine.low %v349_v34, %v377_v38  ;;  %v386_v42 = vcombine.high %v3871_v39, %v3874_v40  ;;  %v385_v3 = vcombine.low %v3871_v39, %v3874_v40  ;;  %v390_v5 = vcombine.high %v349_v34, %v377_v38  ;;  %v3401_v15 = vld [vmem:[#allocation2 + $0x130] ss:$8 sps:$4 sm:$0xff]   ;;  %v3412_v21 = vld [vmem:[#allocation2 + $0x164] ss:$8 sps:$4 sm:$0xff]   ;;  %v3410_v22 = vld [vmem:[#allocation2 + $0x160] ss:$8 sps:$4 sm:$0xff]  }
  0x5c   :  { %v327_v2 = vcombine.low %v3897_v61, %v3900_v62  ;;  %v3909_v6 = vrot.slane %v323_v1, %v3850_v19  ;;  %v3415_v23 = vld [vmem:[#allocation2 + $0x174] ss:$8 sps:$4 sm:$0xff]   ;;  %v3413_v24 = vld [vmem:[#allocation2 + $0x170] ss:$8 sps:$4 sm:$0xff]   ;;  %v3418_v25 = vld [vmem:[#allocation2 + $0x184] ss:$8 sps:$4 sm:$0xff]  }
  0x5d   :  { %1050 = vmatpush1.bf16.msra.mxu0 %v3346_v12  ;;  %1073 = vmatprep.mubr.bf16.mxu0 %v389_v41  ;;  %v3398_v12 = vld [vmem:[#allocation2 + $0x120] ss:$8 sps:$4 sm:$0xff]   ;;  %v3419_v28 = vld [vmem:[#allocation2 + $0x190] ss:$8 sps:$4 sm:$0xff]   ;;  %v3427_v31 = vld [vmem:[#allocation2 + $0x1b4] ss:$8 sps:$4 sm:$0xff]   ;;  %v324_v41 = vcombine.high %v3891_v59, %v3894_v60 }
  0x5e   :  { %1051 = vmatprep.subr.bf16.mxu0 %v3347_v13  ;;  %v3912_v7 = vrot.slane %v327_v2, %v3850_v19  ;;  %v3403_v13 = vld [vmem:[#allocation2 + $0x134] ss:$8 sps:$4 sm:$0xff]   ;;  %v3416_v26 = vld [vmem:[#allocation2 + $0x180] ss:$8 sps:$4 sm:$0xff]   ;;  %v3425_v32 = vld [vmem:[#allocation2 + $0x1b0] ss:$8 sps:$4 sm:$0xff]  }
  0x5f   :  { %v3422_v30 = vld [vmem:[#allocation2 + $0x1a0] ss:$8 sps:$4 sm:$0xff]   ;;  %v3430_v33 = vld [vmem:[#allocation2 + $0x1c4] ss:$8 sps:$4 sm:$0xff]   ;;  %v3433_v35 = vld [vmem:[#allocation2 + $0x1d4] ss:$8 sps:$4 sm:$0xff]  }
  0x60   :  { %v387_v9 = vcombine.low %v3909_v6, %v3912_v7  ;;  %v3428_v34 = vld [vmem:[#allocation2 + $0x1c0] ss:$8 sps:$4 sm:$0xff]   ;;  %v3445_v53 = vld [vmem:[#allocation2 + $0x214] ss:$8 sps:$4 sm:$0xff]   ;;  %v3443_v56 = vld [vmem:[#allocation2 + $0x210] ss:$8 sps:$4 sm:$0xff]  }
  0x61   :  { %1052 = vmatpush1.bf16.msra.mxu0 %v3349_v16  ;;  %v3406_v16 = vld [vmem:[#allocation2 + $0x144] ss:$8 sps:$4 sm:$0xff]   ;;  %v3434_v38 = vld [vmem:[#allocation2 + $0x1e0] ss:$8 sps:$4 sm:$0xff]   ;;  %v3540_v59 = vld [vmem:[#allocation5 + $0x50] sm:$0xff]   ;;  %vm1536_vm1 = vcmask 261120  }
  0x62   :  { %1053 = vmatprep.subr.bf16.mxu0 %v3350_v17  ;;  %v3404_v17 = vld [vmem:[#allocation2 + $0x140] ss:$8 sps:$4 sm:$0xff]   ;;  %v3541_v39 = vld [vmem:[#allocation5 + $0x10] sm:$0xff]   ;;  %v3542_v40 = vld [vmem:[#allocation5 + $0x58] sm:$0xff]  }
  0x63   :  { %v3537_v54 = vld [vmem:[#allocation5] sm:$0xff]   ;;  %v3538_v55 = vld [vmem:[#allocation5 + $0x48] sm:$0xff]   ;;  %v3457_v2 = vld [vmem:[#allocation2 + $0x254] ss:$8 sps:$4 sm:$0xff]  }
  0x64   :  { %v3446_v60 = vld [vmem:[#allocation2 + $0x220] ss:$8 sps:$4 sm:$0xff]  }
  0x65   :  { %1054 = vmatpush1.bf16.msra.mxu0 %v3352_v18  ;;  %v3409_v18 = vld [vmem:[#allocation2 + $0x154] ss:$8 sps:$4 sm:$0xff]   ;;  %v3452_v1 = vld [vmem:[#allocation2 + $0x240] ss:$8 sps:$4 sm:$0xff]  }
  0x66   :  { %1055 = vmatprep.subr.bf16.mxu0 %v3353_v20  ;;  %v3407_v20 = vld [vmem:[#allocation2 + $0x150] ss:$8 sps:$4 sm:$0xff]  }
  0x69   :  { %1056 = vmatpush1.bf16.msra.mxu0 %v3355_v27  ;;  %v3421_v27 = vld [vmem:[#allocation2 + $0x194] ss:$8 sps:$4 sm:$0xff]  }
  0x6a   :  { %1057 = vmatprep.subr.bf16.mxu0 %v3356_v29  ;;  %v3424_v29 = vld [vmem:[#allocation2 + $0x1a4] ss:$8 sps:$4 sm:$0xff]  }
  0x6d   :  { %1058 = vmatpush1.bf16.msra.mxu0 %v3358_v36  ;;  %v3431_v36 = vld [vmem:[#allocation2 + $0x1d0] ss:$8 sps:$4 sm:$0xff]  }
  0x6e   :  { %1059 = vmatprep.subr.bf16.mxu0 %v3359_v37  ;;  %v3436_v37 = vld [vmem:[#allocation2 + $0x1e4] ss:$8 sps:$4 sm:$0xff]  }
  0x71   :  { %1060 = vmatpush1.bf16.msra.mxu0 %v3361_v43  ;;  %v328_v43 = vcombine.high %v3897_v61, %v3900_v62  ;;  %v3451_v61 = vld [vmem:[#allocation2 + $0x234] ss:$8 sps:$4 sm:$0xff]   ;;  %v3454_v62 = vld [vmem:[#allocation2 + $0x244] ss:$8 sps:$4 sm:$0xff]  }
  0x72   :  { %1061 = vmatprep.subr.bf16.mxu0 %v3362_v44  ;;  %v3439_v44 = vld [vmem:[#allocation2 + $0x1f4] ss:$8 sps:$4 sm:$0xff]  }
  0x75   :  { %1062 = vmatpush1.bf16.msra.mxu0 %v3364_v45  ;;  %v3437_v45 = vld [vmem:[#allocation2 + $0x1f0] ss:$8 sps:$4 sm:$0xff]  }
  0x76   :  { %1063 = vmatprep.subr.bf16.mxu0 %v3365_v46  ;;  %v3921_v46 = vrot.slane %v324_v41, %v3850_v19  ;;  %v3502_v41 = vld [vmem:[#allocation2 + $0x344] ss:$8 sps:$4 sm:$0xff]  }
  0x79   :  { %1064 = vmatpush1.bf16.msra.mxu0 %v3367_v47  ;;  %v3924_v47 = vrot.slane %v328_v43, %v3850_v19  ;;  %v3536_v19 = vld [vmem:[#allocation5 + $0x40] sm:$0xff]  }
  0x7a   :  { %1065 = vmatprep.subr.bf16.mxu0 %v3368_v48  ;;  %v3442_v48 = vld [vmem:[#allocation2 + $0x204] ss:$8 sps:$4 sm:$0xff]   ;;  %3236 = vmatprep.subr.bf16.mxu1 %v3536_v19  ;;  %v3500_v43 = vld [vmem:[#allocation2 + $0x340] ss:$8 sps:$4 sm:$0xff]  }
  0x7b   :  { %3237 = vmatpush3.bf16.msra.mxu1 %v3537_v54  ;;  %v3520_v19 = vld [vmem:[#allocation2 + $0x3a4] ss:$8 sps:$4 sm:$0xff]   ;;  %v3518_v54 = vld [vmem:[#allocation2 + $0x3a0] ss:$8 sps:$4 sm:$0xff]  }
  0x7c   :  { %3238 = vmatprep.subr.bf16.mxu1 %v3538_v55  ;;  %v3523_v55 = vld [vmem:[#allocation2 + $0x3b4] ss:$8 sps:$4 sm:$0xff]  }
  0x7d   :  { %1066 = vmatpush1.bf16.msra.mxu0 %v3370_v49  ;;  %v3440_v49 = vld [vmem:[#allocation2 + $0x200] ss:$8 sps:$4 sm:$0xff]  }
  0x7e   :  { %1067 = vmatprep.subr.bf16.mxu0 %v3371_v50  ;;  %v391_v50 = vcombine.low %v3921_v46, %v3924_v47 }
  0x81   :  { %1068 = vmatpush1.bf16.msra.mxu0 %v3373_v51  ;;  %v392_v51 = vcombine.high %v3921_v46, %v3924_v47  ;;  %v3506_v46 = vld [vmem:[#allocation2 + $0x360] ss:$8 sps:$4 sm:$0xff]   ;;  %v3511_v47 = vld [vmem:[#allocation2 + $0x374] ss:$8 sps:$4 sm:$0xff]  }
  0x82   :  { %1069 = vmatprep.subr.bf16.mxu0 %v3374_v52  ;;  %v388_v52 = vcombine.high %v3909_v6, %v3912_v7  ;;  %v237_v6 = vld [vmem:[%s4116_s2] sm:$0x3]  ;;  %v3952_v7 = vsub.s32 1, %v3847_v14 }
  0x85   :  { %1070 = vmatpush1.bf16.msra.mxu0 %v3376_v57  ;;  %v3448_v57 = vld [vmem:[#allocation2 + $0x224] ss:$8 sps:$4 sm:$0xff]  }
  0x86   :  { %1071 = vmatprep.subr.bf16.mxu0 %v3377_v58  ;;  %v3539_v58 = vld [vmem:[#allocation5 + $0x8] sm:$0xff]  }
  0x87   :  { %3239 = vmatpush3.bf16.msra.mxu1 %v3539_v58  ;;  %v3524_v58 = vld [vmem:[#allocation2 + $0x3c0] ss:$8 sps:$4 sm:$0xff]  }
  0x88   :  { %3240 = vmatprep.subr.bf16.mxu1 %v3540_v59  ;;  %v3529_v59 = vld [vmem:[#allocation2 + $0x3d4] ss:$8 sps:$4 sm:$0xff]  }
  0x89   :  { %1072 = vmatpush1.bf16.msra.mxu0 %v3379_v63  ;;  %v3543_v63 = vld [vmem:[#allocation5 + $0x18] sm:$0xff]  }
  0x8a   :  { %1084 = vmatprep.subr.bf16.mxu0 %v3394_v0  ;;  %v3544_v0 = vld [vmem:[#allocation5 + $0x60] sm:$0xff]  }
  0x8b   :  { %3241 = vmatpush3.bf16.msra.mxu1 %v3541_v39  ;;  %v3530_v39 = vld [vmem:[#allocation2 + $0x3e0] ss:$8 sps:$4 sm:$0xff]  }
  0x8c   :  { %1074 = vmatmul.mubr.bf16.vlgmr.msra.gmra.mrb[0].mxu0 %v385_v3  ;;  %3242 = vmatprep.subr.bf16.mxu1 %v3542_v40  ;;  %v3545_v3 = vld [vmem:[#allocation5 + $0x20] sm:$0xff]   ;;  %v3535_v40 = vld [vmem:[#allocation2 + $0x3f4] ss:$8 sps:$4 sm:$0xff]  }
  0x8d   :  { %1085 = vmatpush1.bf16.msra.mxu0 %v3392_v4  ;;  %1116 = vmatprep.mubr.bf16.mxu0 %v390_v5  ;;  %v3546_v4 = vld [vmem:[#allocation5 + $0x68] sm:$0xff]   ;;  %v3455_v5 = vld [vmem:[#allocation2 + $0x250] ss:$8 sps:$4 sm:$0xff]  }
  0x8e   :  { %1086 = vmatprep.subr.bf16.mxu0 %v3397_v8  ;;  %v3460_v8 = vld [vmem:[#allocation2 + $0x264] ss:$8 sps:$4 sm:$0xff]  }
  0x8f   :  { %3243 = vmatpush3.bf16.msra.mxu1 %v3543_v63  ;;  %v3548_v63 = vld [vmem:[#allocation5 + $0x70] sm:$0xff]  }
  0x90   :  { %3244 = vmatprep.subr.bf16.mxu1 %v3544_v0  ;;  %v3549_v0 = vld [vmem:[#allocation5 + $0x30] sm:$0xff]  }
  0x91   :  { %1087 = vmatpush1.bf16.msra.mxu0 %v3395_v10  ;;  %v3458_v10 = vld [vmem:[#allocation2 + $0x260] ss:$8 sps:$4 sm:$0xff]  }
  0x92   :  { %1088 = vmatprep.subr.bf16.mxu0 %v3400_v11  ;;  %v3463_v11 = vld [vmem:[#allocation2 + $0x274] ss:$8 sps:$4 sm:$0xff]  }
  0x93   :  { %3245 = vmatpush3.bf16.msra.mxu1 %v3545_v3  ;;  %v3715_v3 = vmov 0.0  }
  0x94   :  { %3246 = vmatprep.subr.bf16.mxu1 %v3546_v4  ;;  %v3946_v4 = vsub.s32 0, %v3847_v14 }
  0x95   :  { %1089 = vmatpush1.bf16.msra.mxu0 %v3398_v12  ;;  %v3461_v12 = vld [vmem:[#allocation2 + $0x270] ss:$8 sps:$4 sm:$0xff]  }
  0x96   :  { %1090 = vmatprep.subr.bf16.mxu0 %v3403_v13  ;;  %v3466_v13 = vld [vmem:[#allocation2 + $0x284] ss:$8 sps:$4 sm:$0xff]  }
  0x99   :  { %1091 = vmatpush1.bf16.msra.mxu0 %v3401_v15  ;;  %v3464_v15 = vld [vmem:[#allocation2 + $0x280] ss:$8 sps:$4 sm:$0xff]  }
  0x9a   :  { %1092 = vmatprep.subr.bf16.mxu0 %v3406_v16  ;;  %v3469_v16 = vld [vmem:[#allocation2 + $0x294] ss:$8 sps:$4 sm:$0xff]  }
  0x9d   :  { %1093 = vmatpush1.bf16.msra.mxu0 %v3404_v17  ;;  %v3467_v17 = vld [vmem:[#allocation2 + $0x290] ss:$8 sps:$4 sm:$0xff]  }
  0x9e   :  { %1094 = vmatprep.subr.bf16.mxu0 %v3409_v18  ;;  %v3472_v18 = vld [vmem:[#allocation2 + $0x2a4] ss:$8 sps:$4 sm:$0xff]  }
  0xa1   :  { %1095 = vmatpush1.bf16.msra.mxu0 %v3407_v20  ;;  %v3470_v20 = vld [vmem:[#allocation2 + $0x2a0] ss:$8 sps:$4 sm:$0xff]  }
  0xa2   :  { %1096 = vmatprep.subr.bf16.mxu0 %v3412_v21  ;;  %v3475_v21 = vld [vmem:[#allocation2 + $0x2b4] ss:$8 sps:$4 sm:$0xff]  }
  0xa5   :  { %1097 = vmatpush1.bf16.msra.mxu0 %v3410_v22  ;;  %v3473_v22 = vld [vmem:[#allocation2 + $0x2b0] ss:$8 sps:$4 sm:$0xff]  }
  0xa6   :  { %1098 = vmatprep.subr.bf16.mxu0 %v3415_v23  ;;  %v3478_v23 = vld [vmem:[#allocation2 + $0x2c4] ss:$8 sps:$4 sm:$0xff]  }
  0xa9   :  { %1099 = vmatpush1.bf16.msra.mxu0 %v3413_v24  ;;  %v3476_v24 = vld [vmem:[#allocation2 + $0x2c0] ss:$8 sps:$4 sm:$0xff]  }
  0xaa   :  { %1100 = vmatprep.subr.bf16.mxu0 %v3418_v25  ;;  %v3481_v25 = vld [vmem:[#allocation2 + $0x2d4] ss:$8 sps:$4 sm:$0xff]  }
  0xad   :  { %1101 = vmatpush1.bf16.msra.mxu0 %v3416_v26  ;;  %v3479_v26 = vld [vmem:[#allocation2 + $0x2d0] ss:$8 sps:$4 sm:$0xff]  }
  0xae   :  { %1102 = vmatprep.subr.bf16.mxu0 %v3421_v27  ;;  %v3484_v27 = vld [vmem:[#allocation2 + $0x2e4] ss:$8 sps:$4 sm:$0xff]  }
  0xb1   :  { %1103 = vmatpush1.bf16.msra.mxu0 %v3419_v28  ;;  %v3482_v28 = vld [vmem:[#allocation2 + $0x2e0] ss:$8 sps:$4 sm:$0xff]  }
  0xb2   :  { %1104 = vmatprep.subr.bf16.mxu0 %v3424_v29  ;;  %v3487_v29 = vld [vmem:[#allocation2 + $0x2f4] ss:$8 sps:$4 sm:$0xff]  }
  0xb5   :  { %1105 = vmatpush1.bf16.msra.mxu0 %v3422_v30  ;;  %v3485_v30 = vld [vmem:[#allocation2 + $0x2f0] ss:$8 sps:$4 sm:$0xff]  }
  0xb6   :  { %1106 = vmatprep.subr.bf16.mxu0 %v3427_v31  ;;  %v3490_v31 = vld [vmem:[#allocation2 + $0x304] ss:$8 sps:$4 sm:$0xff]  }
  0xb9   :  { %1107 = vmatpush1.bf16.msra.mxu0 %v3425_v32  ;;  %v3488_v32 = vld [vmem:[#allocation2 + $0x300] ss:$8 sps:$4 sm:$0xff]  }
  0xba   :  { %1108 = vmatprep.subr.bf16.mxu0 %v3430_v33  ;;  %v3493_v33 = vld [vmem:[#allocation2 + $0x314] ss:$8 sps:$4 sm:$0xff]  }
  0xbd   :  { %1109 = vmatpush1.bf16.msra.mxu0 %v3428_v34  ;;  %v3491_v34 = vld [vmem:[#allocation2 + $0x310] ss:$8 sps:$4 sm:$0xff]  }
  0xbe   :  { %1110 = vmatprep.subr.bf16.mxu0 %v3433_v35  ;;  %v3496_v35 = vld [vmem:[#allocation2 + $0x324] ss:$8 sps:$4 sm:$0xff]  }
  0xc1   :  { %1111 = vmatpush1.bf16.msra.mxu0 %v3431_v36  ;;  %v3494_v36 = vld [vmem:[#allocation2 + $0x320] ss:$8 sps:$4 sm:$0xff]  }
  0xc2   :  { %1112 = vmatprep.subr.bf16.mxu0 %v3436_v37  ;;  %v3499_v37 = vld [vmem:[#allocation2 + $0x334] ss:$8 sps:$4 sm:$0xff]  }
  0xc5   :  { %1113 = vmatpush1.bf16.msra.mxu0 %v3434_v38  ;;  %v3497_v38 = vld [vmem:[#allocation2 + $0x330] ss:$8 sps:$4 sm:$0xff]  }
  0xc6   :  { %1114 = vmatprep.subr.bf16.mxu0 %v3439_v44  ;;  %v3503_v44 = vld [vmem:[#allocation2 + $0x350] ss:$8 sps:$4 sm:$0xff]  }
  0xc9   :  { %1115 = vmatpush1.bf16.msra.mxu0 %v3437_v45  ;;  %v3508_v45 = vld [vmem:[#allocation2 + $0x364] ss:$8 sps:$4 sm:$0xff]  }
  0xca   :  { %1127 = vmatprep.subr.bf16.mxu0 %v3442_v48  ;;  %v3509_v48 = vld [vmem:[#allocation2 + $0x370] ss:$8 sps:$4 sm:$0xff]  }
  0xcc   :  { %1117 = vmatmul.mubr.bf16.vlgmr.msra.gmra.mrb[0].mxu0 %v386_v42  ;;  %v3449_v42 = vld [vmem:[#allocation2 + $0x230] ss:$8 sps:$4 sm:$0xff]  }
  0xcd   :  { %1128 = vmatpush1.bf16.msra.mxu0 %v3440_v49  ;;  %1159 = vmatprep.mubr.bf16.mxu0 %v391_v50  ;;  %v3514_v49 = vld [vmem:[#allocation2 + $0x384] ss:$8 sps:$4 sm:$0xff]   ;;  %v3512_v50 = vld [vmem:[#allocation2 + $0x380] ss:$8 sps:$4 sm:$0xff]  }
  0xce   :  { %1129 = vmatprep.subr.bf16.mxu0 %v3445_v53  ;;  %v3515_v53 = vld [vmem:[#allocation2 + $0x390] ss:$8 sps:$4 sm:$0xff]  }
  0xd1   :  { %1130 = vmatpush1.bf16.msra.mxu0 %v3443_v56  ;;  %v3521_v56 = vld [vmem:[#allocation2 + $0x3b0] ss:$8 sps:$4 sm:$0xff]  }
  0xd2   :  { %1131 = vmatprep.subr.bf16.mxu0 %v3448_v57  ;;  %v3526_v57 = vld [vmem:[#allocation2 + $0x3c4] ss:$8 sps:$4 sm:$0xff]  }
  0xd5   :  { %1132 = vmatpush1.bf16.msra.mxu0 %v3446_v60  ;;  %v3527_v60 = vld [vmem:[#allocation2 + $0x3d0] ss:$8 sps:$4 sm:$0xff]  }
  0xd6   :  { %1133 = vmatprep.subr.bf16.mxu0 %v3451_v61  ;;  %v3532_v61 = vld [vmem:[#allocation2 + $0x3e4] ss:$8 sps:$4 sm:$0xff]  }
  0xd9   :  { %1134 = vmatpush1.bf16.msra.mxu0 %v3449_v42  ;;  %v3533_v42 = vld [vmem:[#allocation2 + $0x3f0] ss:$8 sps:$4 sm:$0xff]  }
  0xda   :  { %1135 = vmatprep.subr.bf16.mxu0 %v3454_v62  ;;  %v3547_v62 = vld [vmem:[#allocation5 + $0x28] sm:$0xff]  }
  0xdb   :  { %3247 = vmatpush3.bf16.msra.mxu1 %v3547_v62  ;;  %v3573_v62 = vld [vmem:[#allocation7 + $0x34] ss:$8 sps:$4 sm:$0xff]  }
  0xdc   :  { %3248 = vmatprep.subr.bf16.mxu1 %v3548_v63  ;;  %v3571_v63 = vld [vmem:[#allocation7 + $0x30] ss:$8 sps:$4 sm:$0xff]  }
  0xdd   :  { %1136 = vmatpush1.bf16.msra.mxu0 %v3452_v1  ;;  %v3550_v1 = vld [vmem:[#allocation5 + $0x78] sm:$0xff]  }
  0xde   :  { %1137 = vmatprep.subr.bf16.mxu0 %v3457_v2  ;;  %v3551_v2 = vld [vmem:[#allocation5 + $0x38] sm:$0xff]  }
  0xdf   :  { %3249 = vmatpush3.bf16.msra.mxu1 %v3549_v0  ;;  %v3576_v0 = vld [vmem:[#allocation7 + $0x44] ss:$8 sps:$4 sm:$0xff]  }
  0xe0   :  { %3250 = vmatprep.subr.bf16.mxu1 %v3550_v1  ;;  %v3574_v1 = vld [vmem:[#allocation7 + $0x40] ss:$8 sps:$4 sm:$0xff]  }
  0xe1   :  { %1138 = vmatpush1.bf16.msra.mxu0 %v3455_v5  ;;  %v246_v5 = vrot.slane %v237_v6, %v3952_v7 }
  0xe2   :  { %1139 = vmatprep.subr.bf16.mxu0 %v3460_v8 }
  0xe3   :  { %3251 = vmatpush3.bf16.msra.mxu1 %v3551_v2  ;;  %v3579_v2 = vld [vmem:[#allocation7 + $0x54] ss:$8 sps:$4 sm:$0xff]  }
  0xe4   :  { %3270 = vmatprep.subr.bf16.mxu1 %v3715_v3 }
  0xe5   :  { %1140 = vmatpush1.bf16.msra.mxu0 %v3458_v10 }
  0xe6   :  { %1141 = vmatprep.subr.bf16.mxu0 %v3463_v11 }
  0xe9   :  { %1142 = vmatpush1.bf16.msra.mxu0 %v3461_v12 }
  0xea   :  { %1143 = vmatprep.subr.bf16.mxu0 %v3466_v13 }
  0xed   :  { %1144 = vmatpush1.bf16.msra.mxu0 %v3464_v15 }
  0xee   :  { %1145 = vmatprep.subr.bf16.mxu0 %v3469_v16 }
  0xf1   :  { %1146 = vmatpush1.bf16.msra.mxu0 %v3467_v17 }
  0xf2   :  { %1147 = vmatprep.subr.bf16.mxu0 %v3472_v18 }
  0xf5   :  { %1148 = vmatpush1.bf16.msra.mxu0 %v3470_v20 }
  0xf6   :  { %1149 = vmatprep.subr.bf16.mxu0 %v3475_v21 }
  0xf9   :  { %1150 = vmatpush1.bf16.msra.mxu0 %v3473_v22 }
  0xfa   :  { %1151 = vmatprep.subr.bf16.mxu0 %v3478_v23 }
  0xfd   :  { %1152 = vmatpush1.bf16.msra.mxu0 %v3476_v24 }
  0xfe   :  { %1153 = vmatprep.subr.bf16.mxu0 %v3481_v25  ;;  %v3552_v25 = vld [vmem:[%s4119_s5] sm:$0xff]  }
 0x101   :  { %1154 = vmatpush1.bf16.msra.mxu0 %v3479_v26  ;;  %v3553_v26 = vld [vmem:[%s4119_s5 + $0x8] sm:$0xff]  }
 0x102   :  { %1155 = vmatprep.subr.bf16.mxu0 %v3484_v27  ;;  %v3554_v27 = vld [vmem:[%s4119_s5 + $0x10] sm:$0xff]  }
 0x105   :  { %1156 = vmatpush1.bf16.msra.mxu0 %v3482_v28  ;;  %v3555_v28 = vld [vmem:[%s4119_s5 + $0x18] sm:$0xff]  }
 0x106   :  { %1157 = vmatprep.subr.bf16.mxu0 %v3487_v29  ;;  %v3556_v29 = vld [vmem:[%s4119_s5 + $0x20] sm:$0xff]  }
 0x109   :  { %1158 = vmatpush1.bf16.msra.mxu0 %v3485_v30  ;;  %v3557_v30 = vld [vmem:[%s4119_s5 + $0x28] sm:$0xff]  }
 0x10a   :  { %1170 = vmatprep.subr.bf16.mxu0 %v3490_v31  ;;  %v3558_v31 = vld [vmem:[%s4119_s5 + $0x30] sm:$0xff]  }
 0x10c   :  { %1160 = vmatmul.mubr.bf16.vlgmr.msra.gmra.mrb[0].mxu0 %v387_v9  ;;  %v3505_v9 = vld [vmem:[#allocation2 + $0x354] ss:$8 sps:$4 sm:$0xff]  }
 0x10d   :  { %1171 = vmatpush1.bf16.msra.mxu0 %v3488_v32  ;;  %1202 = vmatprep.mubr.bf16.mxu0 %v392_v51  ;;  %v3517_v51 = vld [vmem:[#allocation2 + $0x394] ss:$8 sps:$4 sm:$0xff]  }
 0x10e   :  { %1172 = vmatprep.subr.bf16.mxu0 %v3493_v33  ;;  %v3559_v32 = vld [vmem:[%s4119_s5 + $0x38] sm:$0xff]  }
 0x111   :  { %1173 = vmatpush1.bf16.msra.mxu0 %v3491_v34  ;;  %v3062_v34 = vld [vmem:[%s4118_s4] ss:$0 sm:$0xff] }
 0x112   :  { %1174 = vmatprep.subr.bf16.mxu0 %v3496_v35 }
 0x115   :  { %1175 = vmatpush1.bf16.msra.mxu0 %v3494_v36 }
 0x116   :  { %1176 = vmatprep.subr.bf16.mxu0 %v3499_v37 }
 0x119   :  { %1177 = vmatpush1.bf16.msra.mxu0 %v3497_v38 }
 0x11a   :  { %1178 = vmatprep.subr.bf16.mxu0 %v3502_v41 }
 0x11d   :  { %1179 = vmatpush1.bf16.msra.mxu0 %v3500_v43 }
 0x11e   :  { %1180 = vmatprep.subr.bf16.mxu0 %v3505_v9 }
 0x121   :  { %1181 = vmatpush1.bf16.msra.mxu0 %v3503_v44 }
 0x122   :  { %1182 = vmatprep.subr.bf16.mxu0 %v3508_v45 }
 0x125   :  { %1183 = vmatpush1.bf16.msra.mxu0 %v3506_v46 }
 0x126   :  { %1184 = vmatprep.subr.bf16.mxu0 %v3511_v47  ;;  %v3560_v47 = vld [vmem:[%s4121_s7] sm:$0xff]  }
 0x129   :  { %1185 = vmatpush1.bf16.msra.mxu0 %v3509_v48  ;;  %v3561_v48 = vld [vmem:[%s4121_s7 + $0x8] sm:$0xff]  }
 0x12a   :  { %1186 = vmatprep.subr.bf16.mxu0 %v3514_v49  ;;  %v3564_v49 = vld [vmem:[#allocation7 + $0x4] ss:$8 sps:$4 sm:$0xff]  }
 0x12d   :  { %1187 = vmatpush1.bf16.msra.mxu0 %v3512_v50  ;;  %v3079_v50 = vld [vmem:[%s4120_s6] ss:$0 sm:$0xff] }
 0x12e   :  { %1188 = vmatprep.subr.bf16.mxu0 %v3517_v51 }
 0x131   :  { %1189 = vmatpush1.bf16.msra.mxu0 %v3515_v53 }
 0x132   :  { %1190 = vmatprep.subr.bf16.mxu0 %v3520_v19 }
 0x135   :  { %1191 = vmatpush1.bf16.msra.mxu0 %v3518_v54 }
 0x136   :  { %1192 = vmatprep.subr.bf16.mxu0 %v3523_v55 }
 0x139   :  { %1193 = vmatpush1.bf16.msra.mxu0 %v3521_v56 }
 0x13a   :  { %1194 = vmatprep.subr.bf16.mxu0 %v3526_v57 }
 0x13d   :  { %1195 = vmatpush1.bf16.msra.mxu0 %v3524_v58 }
 0x13e   :  { %1196 = vmatprep.subr.bf16.mxu0 %v3529_v59  ;;  %v3562_v59 = vld [vmem:[#allocation7] ss:$8 sps:$4 sm:$0xff]  }
 0x141   :  { %1197 = vmatpush1.bf16.msra.mxu0 %v3527_v60 }
 0x142   :  { %1198 = vmatprep.subr.bf16.mxu0 %v3532_v61  ;;  %v3567_v61 = vld [vmem:[#allocation7 + $0x14] ss:$8 sps:$4 sm:$0xff]  }
 0x145   :  { %1199 = vmatpush1.bf16.msra.mxu0 %v3530_v39  ;;  %v3565_v39 = vld [vmem:[#allocation7 + $0x10] ss:$8 sps:$4 sm:$0xff]  }
 0x146   :  { %1200 = vmatprep.subr.bf16.mxu0 %v3535_v40  ;;  %v3570_v40 = vld [vmem:[#allocation7 + $0x24] ss:$8 sps:$4 sm:$0xff]  }
 0x149   :  { %1201 = vmatpush1.bf16.msra.mxu0 %v3533_v42  ;;  %v3568_v42 = vld [vmem:[#allocation7 + $0x20] ss:$8 sps:$4 sm:$0xff]  }
 0x14c   :  { %1203 = vmatmul.mubr.bf16.vlgmr.msra.gmra.mrb[0].mxu0 %v388_v52  ;;  %v242_v52 = vrot.slane %v237_v6, %v3946_v4  ;;  %v3582_v6 = vld [vmem:[#allocation7 + $0x64] ss:$8 sps:$4 sm:$0xff]  }
 0x21f   :  { %v1204_v8 = vpop.f32.mrb[0].mxu0 }
 0x220   :  { %v3298_v10 = vadd.f32 %v1204_v8, %v242_v52  ;;  %v1206_v11 = vpop.f32.mrb[1].mxu0  ;;  %v3583_v8 = vld [vmem:[#allocation7 + $0x70] ss:$8 sps:$4 sm:$0xff]  }
 0x221   :  { %v3299_v12 = vadd.f32 %v1206_v11, %v246_v5  ;;  %v1208_v13 = vpop.f32.mrb[2].mxu0  ;;  %v4003_v11 = vld [vmem:[#allocation8] sm:$0xff] }
 0x222   :  { %v3300_v15 = vadd.f32 %v1208_v13, %v242_v52  ;;  %v1210_v16 = vpop.f32.mrb[3].mxu0  ;;  %v1213_v18 = vmax.f32 %v3298_v10, 0.0  ;;  %v3580_v52 = vld [vmem:[#allocation7 + $0x60] ss:$8 sps:$4 sm:$0xff]   ;;  %v3717_v10 = vmov 0  }
 0x223   :  { %v3301_v17 = vadd.f32 %v1210_v16, %v246_v5  ;;  %v1214_v21 = vmax.f32 %v3299_v12, 0.0  ;;  %v3585_v5 = vld [vmem:[#allocation7 + $0x74] ss:$8 sps:$4 sm:$0xff]   ;;  %v4005_v12 = vld [vmem:[#allocation8 + $0x20] sm:$0xff] }
 0x224   :  { %v1215_v20 = vmax.f32 %v3300_v15, 0.0  ;;  %v3108_v13 = vcombine.low %v4003_v11, %v4005_v12  ;;  %v3109_v15 = vcombine.high %v4003_v11, %v4005_v12  ;;  %v1744_v16 = vld [vmem:[#allocation8 + $0x18] sm:$0xff] }
 0x225   :  { %v1216_v22 = vmax.f32 %v3301_v17, 0.0  ;;  %v1748_v17 = vld [vmem:[#allocation8 + $0x38] sm:$0xff] }
 0x226   :  { %v1217_v23 = vpack.c.bf16 %v1215_v20, %v1213_v18  ;;  %v3114_v18 = vcombine.low %v1744_v16, %v1748_v17  ;;  %v3115_v20 = vcombine.high %v1744_v16, %v1748_v17 }
 0x227   :  { %v1218_v24 = vpack.c.bf16 %v1216_v22, %v1214_v21  ;;  %v1752_v21 = vld [vmem:[#allocation8 + $0x58] sm:$0xff] }
 0x228   :  { %2680 = vmatprep.subr.bf16.mxu0 %v3115_v20  ;;  %v1756_v22 = vld [vmem:[#allocation8 + $0x78] sm:$0xff] }
 0x229   :  { %1386 = vmatprep.mubr.bf16.mxu1 %v1218_v24  ;;  %2681 = vmatpush1.bf16.msra.mxu0 %v3114_v18  ;;  %v3123_v24 = vcombine.high %v1752_v21, %v1756_v22 }
 0x22a   :  { %1387 = vmatmul.mubr.bf16.vlgmr.msra.gmra.mrb[0].mxu1 %v1217_v23  ;;  %v3122_v23 = vcombine.low %v1752_v21, %v1756_v22  ;;  %v1749_v22 = vld [vmem:[#allocation8 + $0x40] sm:$0xff] }
 0x22b   :  { %3271 = vmatpush3.bf16.msra.mxu1 %v3552_v25  ;;  %3286 = vmatprep.mubr.msk.bf16.mxu1 %vm3716_vm0, %v3715_v3  ;;  %v1760_v25 = vld [vmem:[#allocation8 + $0x98] sm:$0xff] }
 0x22c   :  { %3272 = vmatprep.subr.bf16.mxu1 %v3715_v3  ;;  %2682 = vmatprep.subr.bf16.mxu0 %v3123_v24 }
 0x22d   :  { %2683 = vmatpush1.bf16.msra.mxu0 %v3122_v23  ;;  %v1753_v23 = vld [vmem:[#allocation8 + $0x60] sm:$0xff] }
 0x22f   :  { %3273 = vmatpush3.bf16.msra.mxu1 %v3553_v26  ;;  %v1764_v26 = vld [vmem:[#allocation8 + $0xb8] sm:$0xff] }
 0x230   :  { %3274 = vmatprep.subr.bf16.mxu1 %v3715_v3 }
 0x233   :  { %3275 = vmatpush3.bf16.msra.mxu1 %v3554_v27  ;;  %v3130_v27 = vcombine.low %v1760_v25, %v1764_v26 }
 0x234   :  { %3276 = vmatprep.subr.bf16.mxu1 %v3715_v3 }
 0x237   :  { %3277 = vmatpush3.bf16.msra.mxu1 %v3555_v28  ;;  %v3131_v28 = vcombine.high %v1760_v25, %v1764_v26 }
 0x238   :  { %3278 = vmatprep.subr.bf16.mxu1 %v3715_v3 }
 0x239   :  { %2684 = vmatprep.subr.bf16.mxu0 %v3131_v28  ;;  %v1757_v28 = vld [vmem:[#allocation8 + $0x80] sm:$0xff] }
 0x23a   :  { %2685 = vmatpush1.bf16.msra.mxu0 %v3130_v27  ;;  %v3117_v27 = vcombine.high %v1749_v22, %v1753_v23 }
 0x23b   :  { %3279 = vmatpush3.bf16.msra.mxu1 %v3556_v29  ;;  %v1768_v29 = vld [vmem:[#allocation8 + $0xd8] sm:$0xff] }
 0x23c   :  { %3280 = vmatprep.subr.bf16.mxu1 %v3715_v3 }
 0x23f   :  { %3281 = vmatpush3.bf16.msra.mxu1 %v3557_v30  ;;  %v1772_v30 = vld [vmem:[#allocation8 + $0xf8] sm:$0xff] }
 0x240   :  { %3282 = vmatprep.subr.bf16.mxu1 %v3715_v3 }
 0x243   :  { %3283 = vmatpush3.bf16.msra.mxu1 %v3558_v31  ;;  %v3138_v31 = vcombine.low %v1768_v29, %v1772_v30 }
 0x244   :  { %3284 = vmatprep.subr.bf16.mxu1 %v3715_v3 }
 0x247   :  { %3285 = vmatpush3.bf16.msra.mxu1 %v3559_v32  ;;  %v3139_v32 = vcombine.high %v1768_v29, %v1772_v30  ;;  %v1761_v29 = vld [vmem:[#allocation8 + $0xa0] sm:$0xff]  ;;  %v3116_v30 = vcombine.low %v1749_v22, %v1753_v23 }
 0x248   :  { %3290 = vmatprep.subr.bf16.mxu1 %v3715_v3 }
 0x249   :  { %2686 = vmatprep.subr.bf16.mxu0 %v3139_v32  ;;  %v1765_v32 = vld [vmem:[#allocation8 + $0xc0] sm:$0xff] }
 0x24a   :  { %2687 = vmatpush1.bf16.msra.mxu0 %v3138_v31  ;;  %v3125_v31 = vcombine.high %v1757_v28, %v1761_v29 }
 0x2fd   :  { %v3252_v33 = vpop.f32.mrb[0].mxu1 }
 0x2fe   :  { %v3253_v35 = vpop.f32.mrb[1].mxu1 }
 0x2ff   :  { %v3254_v36 = vadd.f32 %v3253_v35, %v3252_v33  ;;  %v3255_v37 = vpop.f32.mrb[2].mxu1  ;;  %v1776_v33 = vld [vmem:[#allocation8 + $0x118] sm:$0xff] }
 0x300   :  { %v3256_v38 = vpop.f32.mrb[3].mxu1 }
 0x301   :  { %v1389_v41 = vadd.f32 %v3254_v36, %v3062_v34  ;;  %v3257_v43 = vadd.f32 %v3256_v38, %v3255_v37  ;;  %v1784_v37 = vld [vmem:[#allocation8 + $0x158] sm:$0xff] }
 0x302   :  { %v1788_v38 = vld [vmem:[#allocation8 + $0x178] sm:$0xff] }
 0x303   :  { %v1392_v9 = vadd.f32 %v3257_v43, %v3062_v34  ;;  %v1395_v44 = vmax.f32 %v1389_v41, 0.0  ;;  %v1780_v34 = vld [vmem:[#allocation8 + $0x138] sm:$0xff]  ;;  %v3154_v41 = vcombine.low %v1784_v37, %v1788_v38  ;;  %v3155_v43 = vcombine.high %v1784_v37, %v1788_v38  ;;  %v1777_v37 = vld [vmem:[#allocation8 + $0x120] sm:$0xff] }
 0x304   :  { %v3146_v35 = vcombine.low %v1776_v33, %v1780_v34  ;;  %v3147_v36 = vcombine.high %v1776_v33, %v1780_v34  ;;  %v1769_v33 = vld [vmem:[#allocation8 + $0xe0] sm:$0xff]  ;;  %v3124_v34 = vcombine.low %v1757_v28, %v1761_v29  ;;  %v1868_v28 = vld [vmem:[#allocation8 + $0x3f8] sm:$0xff] }
 0x305   :  { %v1396_v45 = vmax.f32 %v1392_v9, 0.0  ;;  %v1792_v9 = vld [vmem:[#allocation8 + $0x198] sm:$0xff]  ;;  %v3132_v38 = vcombine.low %v1765_v32, %v1769_v33 }
 0x306   :  { %2688 = vmatprep.subr.bf16.mxu0 %v3147_v36  ;;  %v1773_v36 = vld [vmem:[#allocation8 + $0x100] sm:$0xff] }
 0x307   :  { %v1397_v46 = vpack.c.bf16 %v1396_v45, %v1395_v44  ;;  %2689 = vmatpush1.bf16.msra.mxu0 %v3146_v35  ;;  %v1796_v44 = vld [vmem:[#allocation8 + $0x1b8] sm:$0xff]  ;;  %v3133_v35 = vcombine.high %v1765_v32, %v1769_v33  ;;  %v3140_v11 = vcombine.low %v1773_v36, %v1777_v37  ;;  %v1742_v32 = vld [vmem:[#allocation8 + $0x8] sm:$0xff] }
 0x308   :  { %2690 = vmatprep.subr.bf16.mxu0 %v3155_v43  ;;  %v3162_v45 = vcombine.low %v1792_v9, %v1796_v44  ;;  %v1781_v43 = vld [vmem:[#allocation8 + $0x140] sm:$0xff]  ;;  %v1746_v33 = vld [vmem:[#allocation8 + $0x28] sm:$0xff] }
 0x309   :  { %3287 = vmatmul.mubr.bf16.vlgmr.msra.gmra.mrb[4].mxu1 %v1397_v46  ;;  %v3163_v46 = vcombine.high %v1792_v9, %v1796_v44  ;;  %v1785_v9 = vld [vmem:[#allocation8 + $0x160] sm:$0xff] }
 0x30a   :  { %3294 = vmatprep.mubr.msk.bf16.mxu1 %vm3716_vm0, %v3715_v3  ;;  %3291 = vmatpush3.bf16.msra.mxu1 %v3560_v47  ;;  %v1800_v47 = vld [vmem:[#allocation8 + $0x1d8] sm:$0xff]  ;;  %v3149_v12 = vcombine.high %v1781_v43, %v1785_v9  ;;  %v1793_v44 = vld [vmem:[#allocation8 + $0x1a0] sm:$0xff] }
 0x30b   :  { %3292 = vmatprep.subr.bf16.mxu1 %v3715_v3  ;;  %v3577_v3 = vld [vmem:[#allocation7 + $0x50] ss:$8 sps:$4 sm:$0xff]   ;;  %2691 = vmatpush1.bf16.msra.mxu0 %v3154_v41  ;;  %v3141_v41 = vcombine.high %v1773_v36, %v1777_v37  ;;  %v1600_v36 = vld [vmem:[%s4124_s10] sm:$0x3] }
 0x30c   :  { %2692 = vmatprep.subr.bf16.mxu0 %v3163_v46  ;;  %v1605_v37 = vrot.slane %v1600_v36, %v3946_v4 }
 0x30e   :  { %3293 = vmatpush3.bf16.msra.mxu1 %v3561_v48  ;;  %v1804_v48 = vld [vmem:[#allocation8 + $0x1f8] sm:$0xff] }
 0x30f   :  { %1692 = vmatprep.subr.bf16.mxu1 %v3564_v49  ;;  %2693 = vmatpush1.bf16.msra.mxu0 %v3162_v45  ;;  %v3170_v49 = vcombine.low %v1800_v47, %v1804_v48  ;;  %v3148_v45 = vcombine.low %v1781_v43, %v1785_v9 }
 0x3dc   :  { %v1503_v51 = vpop.f32.mrb[4].mxu1 }
 0x3dd   :  { %v1504_v53 = vadd.f32 %v3079_v50, %v1503_v51  ;;  %v3288_v19 = vpop.f32.mrb[5].mxu1  ;;  %v1808_v51 = vld [vmem:[#allocation8 + $0x218] sm:$0xff] }
 0x3de   :  { %v1506_v54 = vpop.f32.mrb[6].mxu1 }
 0x3df   :  { %v1507_v55 = vadd.f32 %v3079_v50, %v1506_v54  ;;  %v3289_v56 = vpop.f32.mrb[7].mxu1  ;;  %v1510_v57 = vmax.f32 %v1504_v53, 0.0  ;;  %v3171_v50 = vcombine.high %v1800_v47, %v1804_v48  ;;  %v1812_v53 = vld [vmem:[#allocation8 + $0x238] sm:$0xff]  ;;  %v1797_v47 = vld [vmem:[#allocation8 + $0x1c0] sm:$0xff] }
 0x3e0   :  { %v3178_v19 = vcombine.low %v1808_v51, %v1812_v53  ;;  %v3179_v54 = vcombine.high %v1808_v51, %v1812_v53  ;;  %v1820_v56 = vld [vmem:[#allocation8 + $0x278] sm:$0xff]  ;;  %v1801_v48 = vld [vmem:[#allocation8 + $0x1e0] sm:$0xff] }
 0x3e1   :  { %v1511_v58 = vmax.f32 %v1507_v55, 0.0  ;;  %2694 = vmatprep.subr.bf16.mxu0 %v3171_v50  ;;  %v1816_v55 = vld [vmem:[#allocation8 + $0x258] sm:$0xff]  ;;  %v3165_v50 = vcombine.high %v1797_v47, %v1801_v48  ;;  %v1805_v51 = vld [vmem:[#allocation8 + $0x200] sm:$0xff] }
 0x3e2   :  { %2695 = vmatpush1.bf16.msra.mxu0 %v3170_v49  ;;  %v1809_v53 = vld [vmem:[#allocation8 + $0x220] sm:$0xff] }
 0x3e3   :  { %v1512_v60 = vpack.c.bf16 %v1511_v58, %v1510_v57  ;;  %2696 = vmatprep.subr.bf16.mxu0 %v3179_v54  ;;  %v3186_v57 = vcombine.low %v1816_v55, %v1820_v56  ;;  %v3187_v58 = vcombine.high %v1816_v55, %v1820_v56  ;;  %v3173_v54 = vcombine.high %v1805_v51, %v1809_v53  ;;  %v1813_v55 = vld [vmem:[#allocation8 + $0x240] sm:$0xff] }
 0x3e4   :  { %v1817_v56 = vld [vmem:[#allocation8 + $0x260] sm:$0xff] }
 0x3e5   :  { %3295 = vmatmul.mubr.msk.bf16.vlgmr.msra.gmra.mrb[8].mxu1 %vm1536_vm1, %v1512_v60  ;;  %v1828_v60 = vld [vmem:[#allocation8 + $0x2b8] sm:$0xff] }
 0x3e6   :  { %1693 = vmatpush1.bf16.msra.mxu1 %v3562_v59  ;;  %1724 = vmatprep.mubr.bf16.mxu1 %v3717_v10  ;;  %v1824_v59 = vld [vmem:[#allocation8 + $0x298] sm:$0xff]  ;;  %v3088_v10 = vld [vmem:[%s4122_s8] ss:$0 sm:$0xff] }
 0x3e7   :  { %1694 = vmatprep.subr.bf16.mxu1 %v3567_v61  ;;  %2697 = vmatpush1.bf16.msra.mxu0 %v3178_v19  ;;  %v3194_v61 = vcombine.low %v1824_v59, %v1828_v60  ;;  %v3164_v19 = vcombine.low %v1797_v47, %v1801_v48 }
 0x3e8   :  { %2698 = vmatprep.subr.bf16.mxu0 %v3187_v58  ;;  %v3181_v58 = vcombine.high %v1813_v55, %v1817_v56 }
 0x3ea   :  { %1695 = vmatpush1.bf16.msra.mxu1 %v3565_v39  ;;  %v3195_v39 = vcombine.high %v1824_v59, %v1828_v60  ;;  %v1821_v59 = vld [vmem:[#allocation8 + $0x280] sm:$0xff] }
 0x3eb   :  { %1696 = vmatprep.subr.bf16.mxu1 %v3570_v40  ;;  %2699 = vmatpush1.bf16.msra.mxu0 %v3186_v57  ;;  %v1832_v40 = vld [vmem:[#allocation8 + $0x2d8] sm:$0xff]  ;;  %v3172_v57 = vcombine.low %v1805_v51, %v1809_v53  ;;  %v1825_v60 = vld [vmem:[#allocation8 + $0x2a0] sm:$0xff]  ;;  %v1754_v51 = vld [vmem:[#allocation8 + $0x68] sm:$0xff] }
 0x3ec   :  { %2700 = vmatprep.subr.bf16.mxu0 %v3195_v39  ;;  %v3189_v39 = vcombine.high %v1821_v59, %v1825_v60 }
 0x3ee   :  { %1697 = vmatpush1.bf16.msra.mxu1 %v3568_v42  ;;  %v1836_v42 = vld [vmem:[#allocation8 + $0x2f8] sm:$0xff] }
 0x3ef   :  { %1698 = vmatprep.subr.bf16.mxu1 %v3573_v62  ;;  %2701 = vmatpush1.bf16.msra.mxu0 %v3194_v61  ;;  %v3202_v62 = vcombine.low %v1832_v40, %v1836_v42  ;;  %v3180_v61 = vcombine.low %v1813_v55, %v1817_v56  ;;  %v1758_v55 = vld [vmem:[#allocation8 + $0x88] sm:$0xff] }
 0x3f0   :  { %v1762_v56 = vld [vmem:[#allocation8 + $0xa8] sm:$0xff] }
 0x3f2   :  { %1699 = vmatpush1.bf16.msra.mxu1 %v3571_v63  ;;  %v3203_v63 = vcombine.high %v1832_v40, %v1836_v42  ;;  %v1829_v40 = vld [vmem:[#allocation8 + $0x2c0] sm:$0xff] }
 0x3f3   :  { %1700 = vmatprep.subr.bf16.mxu1 %v3576_v0  ;;  %v1840_v0 = vld [vmem:[#allocation8 + $0x318] sm:$0xff]  ;;  %v1833_v42 = vld [vmem:[#allocation8 + $0x2e0] sm:$0xff] }
 0x3f4   :  { %2702 = vmatprep.subr.bf16.mxu0 %v3203_v63  ;;  %v3197_v63 = vcombine.high %v1829_v40, %v1833_v42 }
 0x3f5   :  { %2703 = vmatpush1.bf16.msra.mxu0 %v3202_v62  ;;  %v3188_v62 = vcombine.low %v1821_v59, %v1825_v60  ;;  %v1766_v59 = vld [vmem:[#allocation8 + $0xc8] sm:$0xff] }
 0x3f6   :  { %1701 = vmatpush1.bf16.msra.mxu1 %v3574_v1  ;;  %v1844_v1 = vld [vmem:[#allocation8 + $0x338] sm:$0xff]  ;;  %v1770_v60 = vld [vmem:[#allocation8 + $0xe8] sm:$0xff] }
 0x3f7   :  { %1702 = vmatprep.subr.bf16.mxu1 %v3579_v2  ;;  %v3210_v2 = vcombine.low %v1840_v0, %v1844_v1 }
 0x3fa   :  { %1703 = vmatpush1.bf16.msra.mxu1 %v3577_v3  ;;  %v3211_v3 = vcombine.high %v1840_v0, %v1844_v1  ;;  %v1837_v0 = vld [vmem:[#allocation8 + $0x300] sm:$0xff] }
 0x3fb   :  { %1704 = vmatprep.subr.bf16.mxu1 %v3582_v6  ;;  %v1848_v6 = vld [vmem:[#allocation8 + $0x358] sm:$0xff]  ;;  %v1841_v1 = vld [vmem:[#allocation8 + $0x320] sm:$0xff] }
 0x3fc   :  { %2704 = vmatprep.subr.bf16.mxu0 %v3211_v3  ;;  %v3205_v3 = vcombine.high %v1837_v0, %v1841_v1 }
 0x3fd   :  { %2705 = vmatpush1.bf16.msra.mxu0 %v3210_v2  ;;  %v3196_v2 = vcombine.low %v1829_v40, %v1833_v42  ;;  %v1774_v40 = vld [vmem:[#allocation8 + $0x108] sm:$0xff] }
 0x3fe   :  { %1705 = vmatpush1.bf16.msra.mxu1 %v3580_v52  ;;  %v1852_v52 = vld [vmem:[#allocation8 + $0x378] sm:$0xff]  ;;  %v1778_v42 = vld [vmem:[#allocation8 + $0x128] sm:$0xff] }
 0x3ff   :  { %1706 = vmatprep.subr.bf16.mxu1 %v3585_v5  ;;  %v3218_v5 = vcombine.low %v1848_v6, %v1852_v52 }
 0x402   :  { %1707 = vmatpush1.bf16.msra.mxu1 %v3583_v8  ;;  %v3219_v8 = vcombine.high %v1848_v6, %v1852_v52  ;;  %v1845_v6 = vld [vmem:[#allocation8 + $0x340] sm:$0xff] }
 0x403   :  { %2551 = vmatprep.subr.bf16.mxu1 %v3109_v15  ;;  %v1849_v52 = vld [vmem:[#allocation8 + $0x360] sm:$0xff] }
 0x404   :  { %2706 = vmatprep.subr.bf16.mxu0 %v3219_v8  ;;  %v3213_v8 = vcombine.high %v1845_v6, %v1849_v52 }
 0x405   :  { %2707 = vmatpush1.bf16.msra.mxu0 %v3218_v5  ;;  %v3204_v5 = vcombine.low %v1837_v0, %v1841_v1  ;;  %v1782_v0 = vld [vmem:[#allocation8 + $0x148] sm:$0xff] }
 0x406   :  { %v1786_v1 = vld [vmem:[#allocation8 + $0x168] sm:$0xff] }
 0x4b8   :  { %v1574_v15 = vpop.f32.mrb[8].mxu1 }
 0x4b9   :  { %v1575_v16 = vadd.f32 %v3088_v10, %v1574_v15  ;;  %v3296_v17 = vpop.f32.mrb[9].mxu1  ;;  %v1853_v15 = vld [vmem:[#allocation8 + $0x380] sm:$0xff] }
 0x4ba   :  { %v1577_v18 = vpop.f32.mrb[10].mxu1 }
 0x4bb   :  { %v1578_v20 = vadd.f32 %v3088_v10, %v1577_v18  ;;  %v3297_v21 = vpop.f32.mrb[11].mxu1  ;;  %v1581_v24 = vmax.f32 %v1575_v16, 0.0  ;;  %v3212_v10 = vcombine.low %v1845_v6, %v1849_v52  ;;  %v1857_v16 = vld [vmem:[#allocation8 + $0x3a0] sm:$0xff]  ;;  %v1856_v18 = vld [vmem:[#allocation8 + $0x398] sm:$0xff]  ;;  %v1790_v6 = vld [vmem:[#allocation8 + $0x188] sm:$0xff] }
 0x4bc   :  { %v3221_v17 = vcombine.high %v1853_v15, %v1857_v16  ;;  %v3220_v21 = vcombine.low %v1853_v15, %v1857_v16  ;;  %v1794_v52 = vld [vmem:[#allocation8 + $0x1a8] sm:$0xff] }
 0x4bd   :  { %v1582_v25 = vmax.f32 %v1578_v20, 0.0  ;;  %v1860_v20 = vld [vmem:[#allocation8 + $0x3b8] sm:$0xff]  ;;  %v1802_v15 = vld [vmem:[#allocation8 + $0x1e8] sm:$0xff]  ;;  %v3158_v16 = vcombine.low %v1790_v6, %v1794_v52 }
 0x4be   :  { %v3227_v22 = vcombine.high %v1856_v18, %v1860_v20  ;;  %v3226_v23 = vcombine.low %v1856_v18, %v1860_v20  ;;  %v1806_v18 = vld [vmem:[#allocation8 + $0x208] sm:$0xff] }
 0x4bf   :  { %v1583_v26 = vpack.c.bf16 %v1582_v25, %v1581_v24  ;;  %v1861_v24 = vld [vmem:[#allocation8 + $0x3c0] sm:$0xff]  ;;  %v1810_v20 = vld [vmem:[#allocation8 + $0x228] sm:$0xff] }
 0x4c0   :  { %2708 = vmatprep.subr.bf16.mxu0 %v3227_v22  ;;  %v1865_v25 = vld [vmem:[#allocation8 + $0x3e0] sm:$0xff]  ;;  %v3175_v22 = vcombine.high %v1806_v18, %v1810_v20 }
 0x4c1   :  { %1725 = vmatmul.mubr.bf16.vlgmr.msra.gmra.mrb[12].mxu1 %v1583_v26  ;;  %2709 = vmatpush1.bf16.msra.mxu0 %v3226_v23  ;;  %v3229_v26 = vcombine.high %v1861_v24, %v1865_v25  ;;  %v3228_v29 = vcombine.low %v1861_v24, %v1865_v25  ;;  %v1814_v23 = vld [vmem:[#allocation8 + $0x248] sm:$0xff]  ;;  %v3174_v25 = vcombine.low %v1806_v18, %v1810_v20  ;;  %v1799_v18 = vld [vmem:[#allocation8 + $0x1d0] sm:$0xff] }
 0x4c2   :  { %2552 = vmatpush1.bf16.msra.mxu1 %v3108_v13  ;;  %v1789_v13 = vld [vmem:[#allocation8 + $0x180] sm:$0xff]  ;;  %v1818_v24 = vld [vmem:[#allocation8 + $0x268] sm:$0xff]  ;;  %v1803_v20 = vld [vmem:[#allocation8 + $0x1f0] sm:$0xff] }
 0x4c3   :  { %2553 = vmatprep.subr.bf16.mxu1 %v3117_v27  ;;  %v3157_v46 = vcombine.high %v1789_v13, %v1793_v44  ;;  %v3156_v49 = vcombine.low %v1789_v13, %v1793_v44  ;;  %v1864_v27 = vld [vmem:[#allocation8 + $0x3d8] sm:$0xff] }
 0x4c6   :  { %2554 = vmatpush1.bf16.msra.mxu1 %v3116_v30  ;;  %v3235_v30 = vcombine.high %v1864_v27, %v1868_v28 }
 0x4c7   :  { %2555 = vmatprep.subr.bf16.mxu1 %v3125_v31  ;;  %v3234_v31 = vcombine.low %v1864_v27, %v1868_v28  ;;  %v1822_v27 = vld [vmem:[#allocation8 + $0x288] sm:$0xff] }
 0x4c8   :  { %2710 = vmatprep.subr.bf16.mxu0 %v3235_v30  ;;  %v1826_v28 = vld [vmem:[#allocation8 + $0x2a8] sm:$0xff] }
 0x4c9   :  { %2711 = vmatpush1.bf16.msra.mxu0 %v3234_v31  ;;  %v3191_v30 = vcombine.high %v1822_v27, %v1826_v28  ;;  %v1830_v31 = vld [vmem:[#allocation8 + $0x2c8] sm:$0xff] }
 0x4ca   :  { %2556 = vmatpush1.bf16.msra.mxu1 %v3124_v34  ;;  %v3111_v34 = vcombine.high %v1742_v32, %v1746_v33 }
 0x4cb   :  { %2557 = vmatprep.subr.bf16.mxu1 %v3133_v35  ;;  %v3110_v35 = vcombine.low %v1742_v32, %v1746_v33  ;;  %v1834_v32 = vld [vmem:[#allocation8 + $0x2e8] sm:$0xff]  ;;  %v3190_v33 = vcombine.low %v1822_v27, %v1826_v28  ;;  %v1815_v27 = vld [vmem:[#allocation8 + $0x250] sm:$0xff] }
 0x4cc   :  { %v1819_v28 = vld [vmem:[#allocation8 + $0x270] sm:$0xff] }
 0x4ce   :  { %2558 = vmatpush1.bf16.msra.mxu1 %v3132_v38  ;;  %v1609_v38 = vrot.slane %v1600_v36, %v3952_v7  ;;  %v1842_v36 = vld [vmem:[#allocation8 + $0x328] sm:$0xff] }
 0x4cf   :  { %2559 = vmatprep.subr.bf16.mxu1 %v3141_v41 }
 0x4d2   :  { %2560 = vmatpush1.bf16.msra.mxu1 %v3140_v11 }
 0x4d3   :  { %2561 = vmatprep.subr.bf16.mxu1 %v3149_v12 }
 0x4d6   :  { %2562 = vmatpush1.bf16.msra.mxu1 %v3148_v45 }
 0x4d7   :  { %2563 = vmatprep.subr.bf16.mxu1 %v3157_v46 }
 0x4da   :  { %2564 = vmatpush1.bf16.msra.mxu1 %v3156_v49 }
 0x4db   :  { %2565 = vmatprep.subr.bf16.mxu1 %v3165_v50  ;;  %v1750_v50 = vld [vmem:[#allocation8 + $0x48] sm:$0xff] }
 0x4de   :  { %2566 = vmatpush1.bf16.msra.mxu1 %v3164_v19 }
 0x4df   :  { %2567 = vmatprep.subr.bf16.mxu1 %v3173_v54  ;;  %v3119_v54 = vcombine.high %v1750_v50, %v1754_v51 }
 0x4e2   :  { %2568 = vmatpush1.bf16.msra.mxu1 %v3172_v57  ;;  %v3118_v57 = vcombine.low %v1750_v50, %v1754_v51  ;;  %v1743_v50 = vld [vmem:[#allocation8 + $0x10] sm:$0xff] }
 0x4e3   :  { %2569 = vmatprep.subr.bf16.mxu1 %v3181_v58  ;;  %v3127_v58 = vcombine.high %v1758_v55, %v1762_v56  ;;  %v1747_v51 = vld [vmem:[#allocation8 + $0x30] sm:$0xff] }
 0x4e6   :  { %2570 = vmatpush1.bf16.msra.mxu1 %v3180_v61  ;;  %v3126_v61 = vcombine.low %v1758_v55, %v1762_v56  ;;  %v3113_v55 = vcombine.high %v1743_v50, %v1747_v51  ;;  %v1751_v56 = vld [vmem:[#allocation8 + $0x50] sm:$0xff] }
 0x4e7   :  { %2571 = vmatprep.subr.bf16.mxu1 %v3189_v39  ;;  %v3135_v39 = vcombine.high %v1766_v59, %v1770_v60 }
 0x4ea   :  { %2572 = vmatpush1.bf16.msra.mxu1 %v3188_v62  ;;  %v3134_v62 = vcombine.low %v1766_v59, %v1770_v60  ;;  %v1759_v60 = vld [vmem:[#allocation8 + $0x90] sm:$0xff] }
 0x4eb   :  { %2573 = vmatprep.subr.bf16.mxu1 %v3197_v63  ;;  %v3143_v63 = vcombine.high %v1774_v40, %v1778_v42 }
 0x4ee   :  { %2574 = vmatpush1.bf16.msra.mxu1 %v3196_v2  ;;  %v3142_v2 = vcombine.low %v1774_v40, %v1778_v42  ;;  %v1767_v42 = vld [vmem:[#allocation8 + $0xd0] sm:$0xff] }
 0x4ef   :  { %2575 = vmatprep.subr.bf16.mxu1 %v3205_v3  ;;  %v3151_v3 = vcombine.high %v1782_v0, %v1786_v1 }
 0x4f2   :  { %2576 = vmatpush1.bf16.msra.mxu1 %v3204_v5  ;;  %v3150_v5 = vcombine.low %v1782_v0, %v1786_v1  ;;  %v1775_v1 = vld [vmem:[#allocation8 + $0x110] sm:$0xff] }
 0x4f3   :  { %2577 = vmatprep.subr.bf16.mxu1 %v3213_v8  ;;  %v3159_v8 = vcombine.high %v1790_v6, %v1794_v52  ;;  %v1783_v52 = vld [vmem:[#allocation8 + $0x150] sm:$0xff] }
 0x4f6   :  { %2578 = vmatpush1.bf16.msra.mxu1 %v3212_v10  ;;  %v1798_v10 = vld [vmem:[#allocation8 + $0x1c8] sm:$0xff] }
 0x4f7   :  { %2579 = vmatprep.subr.bf16.mxu1 %v3221_v17  ;;  %v3167_v17 = vcombine.high %v1798_v10, %v1802_v15 }
 0x4fa   :  { %2580 = vmatpush1.bf16.msra.mxu1 %v3220_v21  ;;  %v3166_v21 = vcombine.low %v1798_v10, %v1802_v15  ;;  %v1791_v10 = vld [vmem:[#allocation8 + $0x190] sm:$0xff] }
 0x4fb   :  { %2581 = vmatprep.subr.bf16.mxu1 %v3229_v26  ;;  %v3183_v26 = vcombine.high %v1814_v23, %v1818_v24  ;;  %v1795_v15 = vld [vmem:[#allocation8 + $0x1b0] sm:$0xff] }
 0x4fe   :  { %2582 = vmatpush1.bf16.msra.mxu1 %v3228_v29  ;;  %v3182_v29 = vcombine.low %v1814_v23, %v1818_v24  ;;  %v1807_v23 = vld [vmem:[#allocation8 + $0x210] sm:$0xff] }
 0x4ff   :  { %2594 = vmatprep.subr.bf16.mxu1 %v3111_v34  ;;  %v3199_v34 = vcombine.high %v1830_v31, %v1834_v32  ;;  %v1811_v24 = vld [vmem:[#allocation8 + $0x230] sm:$0xff] }
 0x594   :  { %v1726_v41 = vpop.f32.mrb[12].mxu1 }
 0x595   :  { %v1727_v43 = vadd.f32 %v1726_v41, %v1605_v37  ;;  %v1728_v9 = vpop.f32.mrb[13].mxu1  ;;  %v1846_v41 = vld [vmem:[#allocation8 + $0x348] sm:$0xff] }
 0x596   :  { %v1729_v11 = vadd.f32 %v1728_v9, %v1609_v38  ;;  %v1730_v12 = vpop.f32.mrb[14].mxu1 }
 0x597   :  { %v1731_v13 = vadd.f32 %v1730_v12, %v1605_v37  ;;  %v1732_v44 = vpop.f32.mrb[15].mxu1  ;;  %v1735_v46 = vmax.f32 %v1727_v43, 0.0  ;;  %v3198_v37 = vcombine.low %v1830_v31, %v1834_v32  ;;  %v1850_v43 = vld [vmem:[#allocation8 + $0x368] sm:$0xff]  ;;  %v1823_v31 = vld [vmem:[#allocation8 + $0x290] sm:$0xff] }
 0x598   :  { %v1733_v45 = vadd.f32 %v1732_v44, %v1609_v38  ;;  %v1736_v48 = vmax.f32 %v1729_v11, 0.0  ;;  %v3215_v11 = vcombine.high %v1846_v41, %v1850_v43  ;;  %v1854_v12 = vld [vmem:[#allocation8 + $0x388] sm:$0xff]  ;;  %v3214_v44 = vcombine.low %v1846_v41, %v1850_v43  ;;  %v1827_v32 = vld [vmem:[#allocation8 + $0x2b0] sm:$0xff] }
 0x599   :  { %v1737_v47 = vmax.f32 %v1731_v13, 0.0  ;;  %v1858_v13 = vld [vmem:[#allocation8 + $0x3a8] sm:$0xff]  ;;  %v1839_v41 = vld [vmem:[#allocation8 + $0x310] sm:$0xff] }
 0x59a   :  { %v1738_v49 = vmax.f32 %v1733_v45, 0.0  ;;  %v3223_v45 = vcombine.high %v1854_v12, %v1858_v13  ;;  %v1843_v43 = vld [vmem:[#allocation8 + $0x330] sm:$0xff] }
 0x59b   :  { %v4022_v53 = vpack.c.bf16 %v1737_v47, %v1735_v46  ;;  %v1862_v46 = vld [vmem:[#allocation8 + $0x3c8] sm:$0xff] }
 0x59c   :  { %v4024_v19 = vpack.c.bf16 %v1738_v49, %v1736_v48  ;;  %v1866_v47 = vld [vmem:[#allocation8 + $0x3e8] sm:$0xff]  ;;  %v3222_v48 = vcombine.low %v1854_v12, %v1858_v13  ;;  %v1847_v12 = vld [vmem:[#allocation8 + $0x350] sm:$0xff] }
 0x59d   :  { %v3231_v49 = vcombine.high %v1862_v46, %v1866_v47  ;;  %v1851_v13 = vld [vmem:[#allocation8 + $0x370] sm:$0xff] }
 0x59e   :  { %2583 = vmatprep.mubr.bf16.mxu1 %v4024_v19  ;;  %2712 = vmatprep.mubr.bf16.mxu0 %v4024_v19 }
 0x59f   :  { %2584 = vmatmul.mubr.bf16.vlgmr.msra.gmra.mrb[16].mxu1 %v4022_v53  ;;  %2713 = vmatmul.mubr.bf16.vlgmr.msra.gmra.mrb[4].mxu0 %v4022_v53 }
 0x5a0   :  { %2595 = vmatpush1.bf16.msra.mxu1 %v3110_v35  ;;  %2626 = vmatprep.mubr.bf16.mxu1 %v4024_v19  ;;  %v1838_v35 = vld [vmem:[#allocation8 + $0x308] sm:$0xff] }
 0x5a1   :  { %2596 = vmatprep.subr.bf16.mxu1 %v3119_v54  ;;  %v3207_v38 = vcombine.high %v1838_v35, %v1842_v36  ;;  %v3206_v9 = vcombine.low %v1838_v35, %v1842_v36  ;;  %v3230_v54 = vcombine.low %v1862_v46, %v1866_v47  ;;  %v1831_v35 = vld [vmem:[#allocation8 + $0x2d0] sm:$0xff] }
 0x5a2   :  { %v1835_v36 = vld [vmem:[#allocation8 + $0x2f0] sm:$0xff] }
 0x5a3   :  { %v1855_v46 = vld [vmem:[#allocation8 + $0x390] sm:$0xff] }
 0x5a4   :  { %2597 = vmatpush1.bf16.msra.mxu1 %v3118_v57  ;;  %v1755_v57 = vld [vmem:[#allocation8 + $0x70] sm:$0xff] }
 0x5a5   :  { %2598 = vmatprep.subr.bf16.mxu1 %v3127_v58  ;;  %v3112_v58 = vcombine.low %v1743_v50, %v1747_v51  ;;  %v3121_v59 = vcombine.high %v1751_v56, %v1755_v57  ;;  %v1859_v47 = vld [vmem:[#allocation8 + $0x3b0] sm:$0xff] }
 0x5a6   :  { %v1863_v50 = vld [vmem:[#allocation8 + $0x3d0] sm:$0xff] }
 0x5a7   :  { %v1867_v51 = vld [vmem:[#allocation8 + $0x3f0] sm:$0xff] }
 0x5a8   :  { %2599 = vmatpush1.bf16.msra.mxu1 %v3126_v61  ;;  %v1763_v61 = vld [vmem:[#allocation8 + $0xb0] sm:$0xff] }
 0x5a9   :  { %2600 = vmatprep.subr.bf16.mxu1 %v3135_v39  ;;  %v3120_v39 = vcombine.low %v1751_v56, %v1755_v57  ;;  %v3129_v40 = vcombine.high %v1759_v60, %v1763_v61  ;;  %v3232_v56 = vcombine.low %v1863_v50, %v1867_v51  ;;  %v1897_v57 = vsub.s32 6, %v3847_v14 }
 0x5ac   :  { %2601 = vmatpush1.bf16.msra.mxu1 %v3134_v62  ;;  %v1771_v62 = vld [vmem:[#allocation8 + $0xf0] sm:$0xff] }
 0x5ad   :  { %2602 = vmatprep.subr.bf16.mxu1 %v3143_v63  ;;  %v3128_v63 = vcombine.low %v1759_v60, %v1763_v61  ;;  %v3137_v0 = vcombine.high %v1767_v42, %v1771_v62 }
 0x5b0   :  { %2603 = vmatpush1.bf16.msra.mxu1 %v3142_v2  ;;  %v1779_v2 = vld [vmem:[#allocation8 + $0x130] sm:$0xff] }
 0x5b1   :  { %2604 = vmatprep.subr.bf16.mxu1 %v3151_v3  ;;  %v3136_v3 = vcombine.low %v1767_v42, %v1771_v62  ;;  %v3145_v6 = vcombine.high %v1775_v1, %v1779_v2 }
 0x5b4   :  { %2605 = vmatpush1.bf16.msra.mxu1 %v3150_v5  ;;  %v1787_v5 = vld [vmem:[#allocation8 + $0x170] sm:$0xff] }
 0x5b5   :  { %2606 = vmatprep.subr.bf16.mxu1 %v3159_v8  ;;  %v3144_v8 = vcombine.low %v1775_v1, %v1779_v2 }
 0x5b8   :  { %2607 = vmatpush1.bf16.msra.mxu1 %v3158_v16  ;;  %v3152_v16 = vcombine.low %v1783_v52, %v1787_v5 }
 0x5b9   :  { %2608 = vmatprep.subr.bf16.mxu1 %v3167_v17  ;;  %v3161_v17 = vcombine.high %v1791_v10, %v1795_v15 }
 0x5bc   :  { %2609 = vmatpush1.bf16.msra.mxu1 %v3166_v21  ;;  %v3160_v21 = vcombine.low %v1791_v10, %v1795_v15 }
 0x5bd   :  { %2610 = vmatprep.subr.bf16.mxu1 %v3175_v22  ;;  %v3169_v22 = vcombine.high %v1799_v18, %v1803_v20 }
 0x5c0   :  { %2611 = vmatpush1.bf16.msra.mxu1 %v3174_v25  ;;  %v3168_v25 = vcombine.low %v1799_v18, %v1803_v20 }
 0x5c1   :  { %2612 = vmatprep.subr.bf16.mxu1 %v3183_v26  ;;  %v3177_v26 = vcombine.high %v1807_v23, %v1811_v24 }
 0x5c4   :  { %2613 = vmatpush1.bf16.msra.mxu1 %v3182_v29  ;;  %v3176_v29 = vcombine.low %v1807_v23, %v1811_v24  ;;  %v3718_v24 = vmov 1983009808  }
 0x5c5   :  { %2614 = vmatprep.subr.bf16.mxu1 %v3191_v30  ;;  %v3185_v30 = vcombine.high %v1815_v27, %v1819_v28 }
 0x5c8   :  { %2615 = vmatpush1.bf16.msra.mxu1 %v3190_v33  ;;  %v3184_v33 = vcombine.low %v1815_v27, %v1819_v28  ;;  %v1885_v27 = vsub.s32 3, %v3847_v14 }
 0x5c9   :  { %2616 = vmatprep.subr.bf16.mxu1 %v3199_v34  ;;  %v3193_v34 = vcombine.high %v1823_v31, %v1827_v32 }
 0x5cc   :  { %2617 = vmatpush1.bf16.msra.mxu1 %v3198_v37  ;;  %v3192_v37 = vcombine.low %v1823_v31, %v1827_v32 }
 0x5cd   :  { %2618 = vmatprep.subr.bf16.mxu1 %v3207_v38  ;;  %v3201_v38 = vcombine.high %v1831_v35, %v1835_v36 }
 0x5d0   :  { %2619 = vmatpush1.bf16.msra.mxu1 %v3206_v9  ;;  %v3200_v9 = vcombine.low %v1831_v35, %v1835_v36 }
 0x5d1   :  { %2620 = vmatprep.subr.bf16.mxu1 %v3215_v11  ;;  %v3209_v11 = vcombine.high %v1839_v41, %v1843_v43 }
 0x5d4   :  { %2621 = vmatpush1.bf16.msra.mxu1 %v3214_v44  ;;  %v3208_v44 = vcombine.low %v1839_v41, %v1843_v43 }
 0x5d5   :  { %2622 = vmatprep.subr.bf16.mxu1 %v3223_v45  ;;  %v3217_v45 = vcombine.high %v1847_v12, %v1851_v13 }
 0x5d8   :  { %2623 = vmatpush1.bf16.msra.mxu1 %v3222_v48  ;;  %v3216_v48 = vcombine.low %v1847_v12, %v1851_v13 }
 0x5d9   :  { %2624 = vmatprep.subr.bf16.mxu1 %v3231_v49  ;;  %v3225_v49 = vcombine.high %v1855_v46, %v1859_v47 }
 0x5dc   :  { %2625 = vmatpush1.bf16.msra.mxu1 %v3230_v54  ;;  %v3224_v54 = vcombine.low %v1855_v46, %v1859_v47 }
 0x5dd   :  { %2637 = vmatprep.subr.bf16.mxu1 %v3113_v55  ;;  %v3233_v55 = vcombine.high %v1863_v50, %v1867_v51 }
 0x5df   :  { %2627 = vmatmul.mubr.bf16.vlgmr.msra.gmra.mrb[20].mxu1 %v4022_v53 }
 0x5e0   :  { %2638 = vmatpush1.bf16.msra.mxu1 %v3112_v58  ;;  %2669 = vmatprep.mubr.bf16.mxu1 %v4024_v19  ;;  %v3153_v19 = vcombine.high %v1783_v52, %v1787_v5  ;;  %v4038_v58 = vld [vmem:[%s4126_s12] sm:$0xff] }
 0x5e1   :  { %2639 = vmatprep.subr.bf16.mxu1 %v3121_v59  ;;  %v1901_v59 = vsub.s32 7, %v3847_v14  ;;  %v1874_v60 = vrot.slane %v4038_v58, %v3946_v4  ;;  %v1898_v61 = vrot.slane %v4038_v58, %v1897_v57 }
 0x5e4   :  { %2640 = vmatpush1.bf16.msra.mxu1 %v3120_v39  ;;  %v1878_v39 = vrot.slane %v4038_v58, %v3952_v7 }
 0x5e5   :  { %2641 = vmatprep.subr.bf16.mxu1 %v3129_v40  ;;  %v1902_v40 = vrot.slane %v4038_v58, %v1901_v59 }
 0x5e8   :  { %2642 = vmatpush1.bf16.msra.mxu1 %v3128_v63 }
 0x5e9   :  { %2643 = vmatprep.subr.bf16.mxu1 %v3137_v0 }
 0x5ec   :  { %2644 = vmatpush1.bf16.msra.mxu1 %v3136_v3 }
 0x5ed   :  { %2645 = vmatprep.subr.bf16.mxu1 %v3145_v6 }
 0x5f0   :  { %2646 = vmatpush1.bf16.msra.mxu1 %v3144_v8 }
 0x5f1   :  { %2647 = vmatprep.subr.bf16.mxu1 %v3153_v19 }
 0x5f4   :  { %2648 = vmatpush1.bf16.msra.mxu1 %v3152_v16 }
 0x5f5   :  { %2649 = vmatprep.subr.bf16.mxu1 %v3161_v17 }
 0x5f8   :  { %2650 = vmatpush1.bf16.msra.mxu1 %v3160_v21 }
 0x5f9   :  { %2651 = vmatprep.subr.bf16.mxu1 %v3169_v22 }
 0x5fc   :  { %2652 = vmatpush1.bf16.msra.mxu1 %v3168_v25  ;;  %v2744_v25 = vunpack.c.l.s4 %v3718_v24 }
 0x5fd   :  { %2653 = vmatprep.subr.bf16.mxu1 %v3177_v26  ;;  %v1881_v26 = vsub.s32 2, %v3847_v14 }
 0x5fe   :  { %v2745_v28 = vunpack.c.0.s8 %v2744_v25 }
 0x600   :  { %2654 = vmatpush1.bf16.msra.mxu1 %v3176_v29  ;;  %v1882_v29 = vrot.slane %v4038_v58, %v1881_v26  ;;  %v4068_v32 = vsub.s32 %v2745_v28, %v3847_v14 }
 0x601   :  { %2655 = vmatprep.subr.bf16.mxu1 %v3185_v30  ;;  %v1886_v30 = vrot.slane %v4038_v58, %v1885_v27 }
 0x604   :  { %2656 = vmatpush1.bf16.msra.mxu1 %v3184_v33 }
 0x605   :  { %2657 = vmatprep.subr.bf16.mxu1 %v3193_v34 }
 0x608   :  { %2658 = vmatpush1.bf16.msra.mxu1 %v3192_v37 }
 0x609   :  { %2659 = vmatprep.subr.bf16.mxu1 %v3201_v38 }
 0x60c   :  { %2660 = vmatpush1.bf16.msra.mxu1 %v3200_v9 }
 0x60d   :  { %2661 = vmatprep.subr.bf16.mxu1 %v3209_v11 }
 0x610   :  { %2662 = vmatpush1.bf16.msra.mxu1 %v3208_v44 }
 0x611   :  { %2663 = vmatprep.subr.bf16.mxu1 %v3217_v45 }
 0x614   :  { %2664 = vmatpush1.bf16.msra.mxu1 %v3216_v48 }
 0x615   :  { %2665 = vmatprep.subr.bf16.mxu1 %v3225_v49 }
 0x618   :  { %2666 = vmatpush1.bf16.msra.mxu1 %v3224_v54 }
 0x619   :  { %2667 = vmatprep.subr.bf16.mxu1 %v3233_v55 }
 0x61c   :  { %2668 = vmatpush1.bf16.msra.mxu1 %v3232_v56 }
 0x61f   :  { %2670 = vmatmul.mubr.bf16.vlgmr.msra.gmra.mrb[24].mxu1 %v4022_v53 }
 0x672   :  { %v2585_v53 = vpop.f32.mrb[16].mxu1  ;;  %v2714_v42 = vpop.f32.mrb[4].mxu0 }
 0x673   :  { %v2586_v62 = vadd.f32 %v2585_v53, %v1874_v60  ;;  %v4047_v63 = vadd.f32 %v2714_v42, %v1898_v61  ;;  %v2587_v0 = vpop.f32.mrb[17].mxu1  ;;  %v2716_v1 = vpop.f32.mrb[5].mxu0 }
 0x674   :  { %v2588_v2 = vadd.f32 %v2587_v0, %v1878_v39  ;;  %v4049_v3 = vadd.f32 %v2716_v1, %v1902_v40  ;;  %v2589_v6 = vpop.f32.mrb[18].mxu1  ;;  %v2718_v52 = vpop.f32.mrb[6].mxu0 }
 0x675   :  { %v2590_v4 = vadd.f32 %v2589_v6, %v1874_v60  ;;  %v4051_v5 = vadd.f32 %v2718_v52, %v1898_v61  ;;  %v2591_v8 = vpop.f32.mrb[19].mxu1  ;;  %v2720_v19 = vpop.f32.mrb[7].mxu0 }
 0x676   :  { %v2739_v7 = vcombine.low %v2586_v62, %v2588_v2  ;;  %v2740_v10 = vcombine.high %v2586_v62, %v2588_v2  ;;  %v2777_v15 = vcombine.low %v4047_v63, %v4049_v3  ;;  %v2778_v16 = vcombine.high %v4047_v63, %v4049_v3 }
 0x677   :  { %v2592_v17 = vadd.f32 %v2591_v8, %v1878_v39  ;;  %v4057_v18 = vadd.f32 %v2720_v19, %v1902_v40  ;;  %v1889_v39 = vsub.s32 4, %v3847_v14  ;;  %v1893_v40 = vsub.s32 5, %v3847_v14 }
 0x678   :  { %v2749_v11 = vrot.slane %v2739_v7, %v4068_v32  ;;  %v2756_v12 = vrot.slane %v2740_v10, %v4068_v32  ;;  %v2799_v10 = vrot.slane %v2777_v15, %v4068_v32  ;;  %v2806_v14 = vrot.slane %v2778_v16, %v4068_v32 }
 0x679   :  { %v2811_v20 = vcombine.low %v2590_v4, %v2592_v17  ;;  %v2812_v21 = vcombine.high %v2590_v4, %v2592_v17  ;;  %v2849_v22 = vcombine.low %v4051_v5, %v4057_v18  ;;  %v2850_v23 = vcombine.high %v4051_v5, %v4057_v18 }
 0x67a   :  { %v1890_v53 = vrot.slane %v4038_v58, %v1889_v39  ;;  %v1894_v42 = vrot.slane %v4038_v58, %v1893_v40 }
 0x67b   :  { %v2821_v51 = vrot.slane %v2811_v20, %v4068_v32  ;;  %v2828_v54 = vrot.slane %v2812_v21, %v4068_v32  ;;  %v2871_v15 = vrot.slane %v2849_v22, %v4068_v32  ;;  %v2878_v63 = vrot.slane %v2850_v23, %v4068_v32 }
 0x6b2   :  { %v2628_v31 = vpop.f32.mrb[20].mxu1 }
 0x6b3   :  { %v2629_v33 = vadd.f32 %v2628_v31, %v1882_v29  ;;  %v2630_v34 = vpop.f32.mrb[21].mxu1 }
 0x6b4   :  { %v2631_v35 = vadd.f32 %v2630_v34, %v1886_v30  ;;  %v2632_v36 = vpop.f32.mrb[22].mxu1 }
 0x6b5   :  { %v2633_v37 = vadd.f32 %v2632_v36, %v1882_v29  ;;  %v2634_v38 = vpop.f32.mrb[23].mxu1 }
 0x6b6   :  { %v2741_v41 = vcombine.low %v2629_v33, %v2631_v35  ;;  %v2742_v43 = vcombine.high %v2629_v33, %v2631_v35  ;;  %v2635_v9 = vadd.f32 %v2634_v38, %v1886_v30 }
 0x6b8   :  { %v2763_v13 = vrot.slane %v2741_v41, %v4068_v32  ;;  %v2770_v44 = vrot.slane %v2742_v43, %v4068_v32  ;;  %v2813_v45 = vcombine.low %v2633_v37, %v2635_v9  ;;  %v2814_v46 = vcombine.high %v2633_v37, %v2635_v9 }
 0x6ba   :  { %v2771_v47 = vcombine.low %v2749_v11, %v2763_v13  ;;  %v2772_v48 = vcombine.high %v2749_v11, %v2763_v13  ;;  %v2773_v49 = vcombine.low %v2756_v12, %v2770_v44  ;;  %v2774_v50 = vcombine.high %v2756_v12, %v2770_v44 }
 0x6bb   :  { %v2835_v55 = vrot.slane %v2813_v45, %v4068_v32  ;;  %v2842_v56 = vrot.slane %v2814_v46, %v4068_v32 }
 0x6bc   :  { %2899 = vst [vmem:[#allocation10] sm:$0xff] %v2771_v47  ;;  %2901 = vst [vmem:[#allocation10 + $0x10] sm:$0xff] %v2772_v48 }
 0x6bd   :  { %2903 = vst [vmem:[#allocation10 + $0x20] sm:$0xff] %v2773_v49  ;;  %2905 = vst [vmem:[#allocation10 + $0x30] sm:$0xff] %v2774_v50  ;;  %v2843_v57 = vcombine.low %v2821_v51, %v2835_v55  ;;  %v2844_v59 = vcombine.high %v2821_v51, %v2835_v55  ;;  %v2845_v60 = vcombine.low %v2828_v54, %v2842_v56 }
 0x6be   :  { %v2846_v61 = vcombine.high %v2828_v54, %v2842_v56 }
 0x6bf   :  { %2907 = vst [vmem:[#allocation10 + $0x40] sm:$0xff] %v2843_v57  ;;  %2909 = vst [vmem:[#allocation10 + $0x50] sm:$0xff] %v2844_v59 }
 0x6c0   :  { %2911 = vst [vmem:[#allocation10 + $0x60] sm:$0xff] %v2845_v60  ;;  %2913 = vst [vmem:[#allocation10 + $0x70] sm:$0xff] %v2846_v61 }
 0x6f2   :  { %v2671_v62 = vpop.f32.mrb[24].mxu1 }
 0x6f3   :  { %v2672_v0 = vadd.f32 %v2671_v62, %v1890_v53  ;;  %v2673_v1 = vpop.f32.mrb[25].mxu1 }
 0x6f4   :  { %v2674_v2 = vadd.f32 %v2673_v1, %v1894_v42  ;;  %v2675_v6 = vpop.f32.mrb[26].mxu1 }
 0x6f5   :  { %v2676_v52 = vadd.f32 %v2675_v6, %v1890_v53  ;;  %v2677_v4 = vpop.f32.mrb[27].mxu1 }
 0x6f6   :  { %v2775_v8 = vcombine.low %v2672_v0, %v2674_v2  ;;  %v2776_v19 = vcombine.high %v2672_v0, %v2674_v2  ;;  %v2678_v7 = vadd.f32 %v2677_v4, %v1894_v42 }
 0x6f8   :  { %v2785_v58 = vrot.slane %v2775_v8, %v4068_v32  ;;  %v2792_v17 = vrot.slane %v2776_v19, %v4068_v32  ;;  %v2847_v20 = vcombine.low %v2676_v52, %v2678_v7  ;;  %v2848_v21 = vcombine.high %v2676_v52, %v2678_v7 }
 0x6fa   :  { %v2807_v24 = vcombine.low %v2785_v58, %v2799_v10  ;;  %v2808_v25 = vcombine.high %v2785_v58, %v2799_v10  ;;  %v2809_v26 = vcombine.low %v2792_v17, %v2806_v14  ;;  %v2810_v27 = vcombine.high %v2792_v17, %v2806_v14 }
 0x6fb   :  { %v2857_v3 = vrot.slane %v2847_v20, %v4068_v32  ;;  %v2864_v16 = vrot.slane %v2848_v21, %v4068_v32 }
 0x6fc   :  { %2900 = vst [vmem:[#allocation10 + $0x8] sm:$0xff] %v2807_v24  ;;  %2902 = vst [vmem:[#allocation10 + $0x18] sm:$0xff] %v2808_v25 }
 0x6fd   :  { %2904 = vst [vmem:[#allocation10 + $0x28] sm:$0xff] %v2809_v26  ;;  %2906 = vst [vmem:[#allocation10 + $0x38] sm:$0xff] %v2810_v27  ;;  %v2879_v28 = vcombine.low %v2857_v3, %v2871_v15  ;;  %v2880_v29 = vcombine.high %v2857_v3, %v2871_v15  ;;  %v2881_v30 = vcombine.low %v2864_v16, %v2878_v63 }
 0x6fe   :  { %v2882_v31 = vcombine.high %v2864_v16, %v2878_v63 }
 0x6ff   :  { %2908 = vst [vmem:[#allocation10 + $0x48] sm:$0xff] %v2879_v28  ;;  %2910 = vst [vmem:[#allocation10 + $0x58] sm:$0xff] %v2880_v29 }
 0x700   :  { %2912 = vst [vmem:[#allocation10 + $0x68] sm:$0xff] %v2881_v30  ;;  %2914 = vst [vmem:[#allocation10 + $0x78] sm:$0xff] %v2882_v31 }
 0x701   :  { %2919 = vsyncadd [#allocation4], 1792  ;;  %s3719_s12 = smov [#allocation10]  }
 0x702   :  { %s2920_s9 = sshll.u32 %s3719_s12, 4  ;;  %s2921_s9 = int_to_ptr.vmem [resolvable:$true] %s2920_s9 }
 0x703   :  { %s3674_s3 = scalar_lea.vmem %s2921_s9, 256  ;;  %s3678_s26 = scalar_lea.vmem %s2921_s9, 2048 }
 0x704   :  { %p3675_p4 = scmp.ne.s32.totalorder %s2921_s9, %s3674_s3  ;;  %p3679_p5 = scmp.lt.s32.totalorder %s2921_s9, %s2921_s9 }
 0x705   :  { %p3680_p6 = scmp.lt.s32.totalorder %s3678_s26, %s3674_s3 }
 0x707   :  { %p3681_p7 = por %p3680_p6, %p3679_p5 }
 0x709   :  { %p3682_p8 = pnand %p3681_p7, %p3675_p4 }
 0x70b   :  { %3685 = shalt.err (!%p3682_p8)
}
 0x70c   :  { %s3686_s21 = scalar_lea.hbm %s4127_s13, 256 }
 0x70d   :  { %p3687_p9 = scmp.ne.s32.totalorder %s4127_s13, %s3686_s21  ;;  %p3690_p10 = scmp.lt.u32.totalorder %s3686_s21, %s4127_s13 }
 0x70f   :  { %p3692_p11 = pnand %p3690_p10, %p3687_p9 }
 0x711   :  { %3695 = shalt.err (!%p3692_p11)
}
 0x712   :  { %s3720_s1 = smov 256   ;;  %s3721_s23 = smov 16  }
 0x713   :  { %2926 = dma.vmem_to_hbm [thread:$0]  %s2921_s9, 256, %s4127_s13, [#allocation4], %s3720_s1, %s3720_s1, %s3721_s23  }
 0x714   :  { %3702 = dma.done.wait [#allocation4], 2048  }
 0x715   :  { %3703 = vsyncadd [#allocation4], 4294965248 }
 0x716   :  { %2930 = vsyncpa [#allocation3], 1 }
 0x717   :  { %2931 = vsyncpa [#allocation6], 1 }
 0x718   :  { %2932 = vsyncpa [#allocation9], 1 }
 0x719   :  { %2933 = vsyncpa [#allocation4], 1 }

</bundles_post_ra>
